<compile_context>
chip_gen: v5e
topology: v5e:2x2
jax: 0.10.0
libtpu: 0.0.40
codegen_flags: <defaults>
</compile_context>

<pallas_src>
from functools import partial

import jax
import jax.numpy as jnp
from jax.experimental import pallas as pl
from jax.experimental.pallas import tpu as pltpu

# ----------------------------- config (small) -------------------------------
VOCAB_SIZE = 100
TYPE_VOCAB_SIZE = 2
MAX_POS = 16
HIDDEN = 32
NUM_HEADS = 2
HEAD_DIM = HIDDEN // NUM_HEADS
INTERMEDIATE = 64
NUM_LAYERS = 2
NUM_LABELS = 2
LN_EPS = 1e-12
LANE = 128          # lane-dense padded width for the classifier output

BATCH = 2
SEQ = 8


# ------------------------------ fused kernel ---------------------------------
def _bert_fused_kernel(
    emb_ref, mask_ref,
    emb_ln_g_ref, emb_ln_b_ref,
    wqkv_ref, bqkv_ref,
    wo_ref, bo_ref, ln1_g_ref, ln1_b_ref,
    wi_ref, bi_ref, wo2_ref, bo2_ref, ln2_g_ref, ln2_b_ref,
    pooler_w_ref, pooler_b_ref,
    cls_w_ref, cls_b_ref,
    out_ref,
):
    """Whole BERT-for-seq-classification forward; everything VMEM-resident."""

    def layer_norm(x, g, b):
        mean = jnp.mean(x, axis=-1, keepdims=True)
        var = jnp.mean((x - mean) ** 2, axis=-1, keepdims=True)
        return (x - mean) * jax.lax.rsqrt(var + LN_EPS) * g + b

    # Embedding LayerNorm (no fake zero residual).
    x = layer_norm(emb_ref[...].astype(jnp.float32),
                   emb_ln_g_ref[...], emb_ln_b_ref[...])

    scale = 1.0 / (HEAD_DIM ** 0.5)
    mask = mask_ref[...]                      # (B, S) additive mask, f32

    for l in range(NUM_LAYERS):               # static unroll, NUM_LAYERS=2
        # Fused QKV projection: one (B*S, H) x (H, 3H) matmul.
        qkv = jnp.dot(x, wqkv_ref[l], preferred_element_type=jnp.float32)
        qkv = qkv + bqkv_ref[l]
        q = qkv[:, 0 * HIDDEN:1 * HIDDEN]
        k = qkv[:, 1 * HIDDEN:2 * HIDDEN]
        v = qkv[:, 2 * HIDDEN:3 * HIDDEN]

        # Attention over all (batch, head) pairs, fully in-kernel.
        ctx_rows = []
        for b in range(BATCH):
            m_b = mask[b:b + 1, :]            # (1, S), broadcast over queries
            head_ctx = []
            for h in range(NUM_HEADS):
                r0, r1 = b * SEQ, (b + 1) * SEQ
                c0, c1 = h * HEAD_DIM, (h + 1) * HEAD_DIM
                qs = q[r0:r1, c0:c1]          # (S, D)
                ks = k[r0:r1, c0:c1]
                vs = v[r0:r1, c0:c1]
                # scores = q @ k^T (contract last dims; no explicit transpose)
                s = jax.lax.dot_general(
                    qs, ks, (((1,), (1,)), ((), ())),
                    preferred_element_type=jnp.float32) * scale + m_b
                p = jax.nn.softmax(s, axis=-1)
                head_ctx.append(
                    jnp.dot(p, vs, preferred_element_type=jnp.float32))
            ctx_rows.append(jnp.concatenate(head_ctx, axis=-1))   # (S, HIDDEN)
        ctx = jnp.concatenate(ctx_rows, axis=0)                   # (B*S, HIDDEN)

        # Attention output projection + Add & LayerNorm.
        attn_out = jnp.dot(ctx, wo_ref[l],
                           preferred_element_type=jnp.float32) + bo_ref[l]
        x = layer_norm(attn_out + x, ln1_g_ref[l], ln1_b_ref[l])

        # Feed-forward + Add & LayerNorm.
        inter = jnp.dot(x, wi_ref[l],
                        preferred_element_type=jnp.float32) + bi_ref[l]
        # TODO(synk): PyTorch BERT uses exact erf-GELU; tanh approximation here.
        inter = jax.nn.gelu(inter, approximate=True)
        ffn = jnp.dot(inter, wo2_ref[l],
                      preferred_element_type=jnp.float32) + bo2_ref[l]
        x = layer_norm(ffn + x, ln2_g_ref[l], ln2_b_ref[l])

    # Pooler: [CLS] token of each batch, dense + tanh (in-kernel row gather).
    cls_tok = jnp.concatenate(
        [x[b * SEQ:b * SEQ + 1, :] for b in range(BATCH)], axis=0)  # (B, HIDDEN)
    pooled = jnp.tanh(
        jnp.dot(cls_tok, pooler_w_ref[...],
                preferred_element_type=jnp.float32) + pooler_b_ref[...])

    # Classifier head, lane-dense padded to (B, LANE).
    logits = jnp.dot(pooled, cls_w_ref[...],
                     preferred_element_type=jnp.float32) + cls_b_ref[...]
    out_ref[...] = logits.astype(out_ref.dtype)


# --------------------------- parameter construction --------------------------
def init_params(key):
    def normal(key, shape, std=0.02):
        return (std * jax.random.normal(key, shape)).astype(jnp.float32)

    keys = iter(jax.random.split(key, 64))
    p = {
        "word_emb": normal(next(keys), (VOCAB_SIZE, HIDDEN)),
        "pos_emb": normal(next(keys), (MAX_POS, HIDDEN)),
        "type_emb": normal(next(keys), (TYPE_VOCAB_SIZE, HIDDEN)),
        "emb_ln_g": jnp.ones((HIDDEN,), jnp.float32),
        "emb_ln_b": jnp.zeros((HIDDEN,), jnp.float32),
        "layers": [],
        "pooler_w": normal(next(keys), (HIDDEN, HIDDEN)),
        "pooler_b": jnp.zeros((HIDDEN,), jnp.float32),
        "cls_w": normal(next(keys), (HIDDEN, NUM_LABELS)),
        "cls_b": jnp.zeros((NUM_LABELS,), jnp.float32),
    }
    for _ in range(NUM_LAYERS):
        layer = {
            "wq": normal(next(keys), (HIDDEN, HIDDEN)),
            "bq": jnp.zeros((HIDDEN,), jnp.float32),
            "wk": normal(next(keys), (HIDDEN, HIDDEN)),
            "bk": jnp.zeros((HIDDEN,), jnp.float32),
            "wv": normal(next(keys), (HIDDEN, HIDDEN)),
            "bv": jnp.zeros((HIDDEN,), jnp.float32),
            "wo": normal(next(keys), (HIDDEN, HIDDEN)),
            "bo": jnp.zeros((HIDDEN,), jnp.float32),
            "ln1_g": jnp.ones((HIDDEN,), jnp.float32),
            "ln1_b": jnp.zeros((HIDDEN,), jnp.float32),
            "wi": normal(next(keys), (HIDDEN, INTERMEDIATE)),
            "bi": jnp.zeros((INTERMEDIATE,), jnp.float32),
            "wo2": normal(next(keys), (INTERMEDIATE, HIDDEN)),
            "bo2": jnp.zeros((HIDDEN,), jnp.float32),
            "ln2_g": jnp.ones((HIDDEN,), jnp.float32),
            "ln2_b": jnp.zeros((HIDDEN,), jnp.float32),
        }
        p["layers"].append(layer)
    return p


def _pack_params(params):
    """Stack per-layer weights (QKV fused) and pad the classifier to 128 lanes."""
    ls = params["layers"]
    packed = {
        "emb_ln_g": params["emb_ln_g"].reshape(1, HIDDEN),
        "emb_ln_b": params["emb_ln_b"].reshape(1, HIDDEN),
        "wqkv": jnp.stack(
            [jnp.concatenate([l["wq"], l["wk"], l["wv"]], axis=1) for l in ls]),
        "bqkv": jnp.stack(
            [jnp.concatenate([l["bq"], l["bk"], l["bv"]]).reshape(1, 3 * HIDDEN)
             for l in ls]),
        "wo": jnp.stack([l["wo"] for l in ls]),
        "bo": jnp.stack([l["bo"].reshape(1, HIDDEN) for l in ls]),
        "ln1_g": jnp.stack([l["ln1_g"].reshape(1, HIDDEN) for l in ls]),
        "ln1_b": jnp.stack([l["ln1_b"].reshape(1, HIDDEN) for l in ls]),
        "wi": jnp.stack([l["wi"] for l in ls]),
        "bi": jnp.stack([l["bi"].reshape(1, INTERMEDIATE) for l in ls]),
        "wo2": jnp.stack([l["wo2"] for l in ls]),
        "bo2": jnp.stack([l["bo2"].reshape(1, HIDDEN) for l in ls]),
        "ln2_g": jnp.stack([l["ln2_g"].reshape(1, HIDDEN) for l in ls]),
        "ln2_b": jnp.stack([l["ln2_b"].reshape(1, HIDDEN) for l in ls]),
        "pooler_w": params["pooler_w"],
        "pooler_b": params["pooler_b"].reshape(1, HIDDEN),
        # lane-dense classifier: pad (HIDDEN, 2) -> (HIDDEN, 128)
        "cls_w_pad": jnp.zeros((HIDDEN, LANE), jnp.float32)
                        .at[:, :NUM_LABELS].set(params["cls_w"]),
        "cls_b_pad": jnp.zeros((1, LANE), jnp.float32)
                        .at[:, :NUM_LABELS].set(params["cls_b"]),
    }
    return packed


# ------------------------------- forward pass --------------------------------
def row_classifier_sc_forward(params, q_r_input, labels=None):
    """Equivalent of RowClassifierSC.forward with labels=None -> logits (B, 2)."""
    input_ids = q_r_input["input_ids"]
    token_type_ids = q_r_input["token_type_ids"]
    attention_mask = q_r_input["attention_mask"].astype(jnp.float32)
    B, S = input_ids.shape

    # Embedding gathers stay in JAX (glue); everything else is one kernel.
    emb = (
        params["word_emb"][input_ids]
        + params["pos_emb"][:S][None, :, :]
        + params["type_emb"][token_type_ids]
    ).reshape(B * S, HIDDEN).astype(jnp.float32)

    mask_add = (1.0 - attention_mask) * -1e9       # (B, S) additive mask

    pk = _pack_params(params)

    logits_pad = pl.pallas_call(
        _bert_fused_kernel,
        out_shape=jax.ShapeDtypeStruct((B, LANE), jnp.float32),
    )(
        emb, mask_add,
        pk["emb_ln_g"], pk["emb_ln_b"],
        pk["wqkv"], pk["bqkv"],
        pk["wo"], pk["bo"], pk["ln1_g"], pk["ln1_b"],
        pk["wi"], pk["bi"], pk["wo2"], pk["bo2"], pk["ln2_g"], pk["ln2_b"],
        pk["pooler_w"], pk["pooler_b"],
        pk["cls_w_pad"], pk["cls_b_pad"],
    )

    # labels=None in the reference usage -> return logits (no loss).
    return logits_pad[:, :NUM_LABELS]


# --------------------------- pure-JAX reference -------------------------------
def _reference_forward(params, q_r_input):
    input_ids = q_r_input["input_ids"]
    token_type_ids = q_r_input["token_type_ids"]
    attention_mask = q_r_input["attention_mask"].astype(jnp.float32)
    B, S = input_ids.shape

    def ln(x, g, b):
        m = jnp.mean(x, -1, keepdims=True)
        v = jnp.mean((x - m) ** 2, -1, keepdims=True)
        return (x - m) * jax.lax.rsqrt(v + LN_EPS) * g + b

    x = (params["word_emb"][input_ids]
         + params["pos_emb"][:S][None, :, :]
         + params["type_emb"][token_type_ids])
    x = ln(x, params["emb_ln_g"], params["emb_ln_b"])
    mask_add = ((1.0 - attention_mask) * -1e9)[:, None, None, :]
    scale = 1.0 / (HEAD_DIM ** 0.5)

    for lp in params["layers"]:
        def heads(t):
            return t.reshape(B, S, NUM_HEADS, HEAD_DIM).transpose(0, 2, 1, 3)
        q = heads(x @ lp["wq"] + lp["bq"])
        k = heads(x @ lp["wk"] + lp["bk"])
        v = heads(x @ lp["wv"] + lp["bv"])
        s = jnp.einsum("bhqd,bhkd->bhqk", q, k) * scale + mask_add
        p = jax.nn.softmax(s, axis=-1)
        ctx = jnp.einsum("bhqk,bhkd->bhqd", p, v).transpose(0, 2, 1, 3)
        ctx = ctx.reshape(B, S, HIDDEN)
        x = ln(ctx @ lp["wo"] + lp["bo"] + x, lp["ln1_g"], lp["ln1_b"])
        inter = jax.nn.gelu(x @ lp["wi"] + lp["bi"], approximate=True)
        x = ln(inter @ lp["wo2"] + lp["bo2"] + x, lp["ln2_g"], lp["ln2_b"])

    pooled = jnp.tanh(x[:, 0, :] @ params["pooler_w"] + params["pooler_b"])
    return pooled @ params["cls_w"] + params["cls_b"]


# ---------------------------------- main -------------------------------------
if __name__ == "__main__":
    key = jax.random.PRNGKey(0)
    pkey, ikey, tkey = jax.random.split(key, 3)

    params = init_params(pkey)

    input_ids = jax.random.randint(ikey, (BATCH, SEQ), 0, VOCAB_SIZE, dtype=jnp.int32)
    token_type_ids = jax.random.randint(tkey, (BATCH, SEQ), 0, TYPE_VOCAB_SIZE, dtype=jnp.int32)
    attention_mask = jnp.ones((BATCH, SEQ), dtype=jnp.int32)

    q_r_input = {
        "input_ids": input_ids,
        "token_type_ids": token_type_ids,
        "attention_mask": attention_mask,
    }

    logits = row_classifier_sc_forward(params, q_r_input, labels=None)
    logits = jax.block_until_ready(logits)

    assert logits.shape == (BATCH, NUM_LABELS)
    assert bool(jnp.all(jnp.isfinite(logits)))

    ref = _reference_forward(params, q_r_input)
    assert bool(jnp.allclose(logits, ref, rtol=1e-3, atol=1e-4))

    print("KERNEL_OK")
</pallas_src>

<mosaic_0001>
module attributes {stable_mosaic.version = 11 : i64} {
  func.func @_bert_fused_kernel(%arg0: memref<16x32xf32, #tpu.memory_space<vmem>>, %arg1: memref<2x8xf32, #tpu.memory_space<vmem>>, %arg2: memref<1x32xf32, #tpu.memory_space<vmem>>, %arg3: memref<1x32xf32, #tpu.memory_space<vmem>>, %arg4: memref<2x32x96xf32, #tpu.memory_space<vmem>>, %arg5: memref<2x1x96xf32, #tpu.memory_space<vmem>>, %arg6: memref<2x32x32xf32, #tpu.memory_space<vmem>>, %arg7: memref<2x1x32xf32, #tpu.memory_space<vmem>>, %arg8: memref<2x1x32xf32, #tpu.memory_space<vmem>>, %arg9: memref<2x1x32xf32, #tpu.memory_space<vmem>>, %arg10: memref<2x32x64xf32, #tpu.memory_space<vmem>>, %arg11: memref<2x1x64xf32, #tpu.memory_space<vmem>>, %arg12: memref<2x64x32xf32, #tpu.memory_space<vmem>>, %arg13: memref<2x1x32xf32, #tpu.memory_space<vmem>>, %arg14: memref<2x1x32xf32, #tpu.memory_space<vmem>>, %arg15: memref<2x1x32xf32, #tpu.memory_space<vmem>>, %arg16: memref<32x32xf32, #tpu.memory_space<vmem>>, %arg17: memref<1x32xf32, #tpu.memory_space<vmem>>, %arg18: memref<32x128xf32, #tpu.memory_space<vmem>>, %arg19: memref<1x128xf32, #tpu.memory_space<vmem>>, %arg20: memref<2x128xf32, #tpu.memory_space<vmem>>) attributes {dimension_semantics = [], scalar_prefetch = 0 : i64, scratch_operands = 0 : i64, tpu.core_type = #tpu.core_type<tc>} {
    %c0 = arith.constant 0 : index
    %c0_0 = arith.constant 0 : index
    %0 = vector.load %arg0[%c0, %c0_0] : memref<16x32xf32, #tpu.memory_space<vmem>>, vector<16x32xf32>
    %c0_1 = arith.constant 0 : index
    %c0_2 = arith.constant 0 : index
    %1 = vector.load %arg2[%c0_1, %c0_2] : memref<1x32xf32, #tpu.memory_space<vmem>>, vector<1x32xf32>
    %c0_3 = arith.constant 0 : index
    %c0_4 = arith.constant 0 : index
    %2 = vector.load %arg3[%c0_3, %c0_4] : memref<1x32xf32, #tpu.memory_space<vmem>>, vector<1x32xf32>
    %cst = arith.constant dense<0.000000e+00> : vector<16xf32>
    %3 = vector.multi_reduction <add>, %0, %cst [1] : vector<16x32xf32> to vector<16xf32>
    %4 = vector.shape_cast %3 : vector<16xf32> to vector<16x1xf32>
    %cst_5 = arith.constant 3.200000e+01 : f32
    %5 = vector.broadcast %cst_5 : f32 to vector<16x1xf32>
    %6 = arith.divf %4, %5 : vector<16x1xf32>
    %7 = vector.broadcast %6 : vector<16x1xf32> to vector<16x32xf32>
    %8 = arith.subf %0, %7 : vector<16x32xf32>
    %9 = arith.mulf %8, %8 : vector<16x32xf32>
    %cst_6 = arith.constant dense<0.000000e+00> : vector<16xf32>
    %10 = vector.multi_reduction <add>, %9, %cst_6 [1] : vector<16x32xf32> to vector<16xf32>
    %11 = vector.shape_cast %10 : vector<16xf32> to vector<16x1xf32>
    %cst_7 = arith.constant 3.200000e+01 : f32
    %12 = vector.broadcast %cst_7 : f32 to vector<16x1xf32>
    %13 = arith.divf %11, %12 : vector<16x1xf32>
    %14 = vector.broadcast %6 : vector<16x1xf32> to vector<16x32xf32>
    %15 = arith.subf %0, %14 : vector<16x32xf32>
    %cst_8 = arith.constant 9.99999996E-13 : f32
    %16 = vector.broadcast %cst_8 : f32 to vector<16x1xf32>
    %17 = arith.addf %13, %16 : vector<16x1xf32>
    %18 = math.rsqrt %17 : vector<16x1xf32>
    %19 = vector.broadcast %18 : vector<16x1xf32> to vector<16x32xf32>
    %20 = arith.mulf %15, %19 : vector<16x32xf32>
    %21 = vector.broadcast %1 : vector<1x32xf32> to vector<16x32xf32>
    %22 = arith.mulf %20, %21 : vector<16x32xf32>
    %23 = vector.broadcast %2 : vector<1x32xf32> to vector<16x32xf32>
    %24 = arith.addf %22, %23 : vector<16x32xf32>
    %c0_9 = arith.constant 0 : index
    %c0_10 = arith.constant 0 : index
    %25 = vector.load %arg1[%c0_9, %c0_10] : memref<2x8xf32, #tpu.memory_space<vmem>>, vector<2x8xf32>
    %c0_11 = arith.constant 0 : index
    %c0_12 = arith.constant 0 : index
    %c0_13 = arith.constant 0 : index
    %26 = vector.load %arg4[%c0_11, %c0_12, %c0_13] : memref<2x32x96xf32, #tpu.memory_space<vmem>>, vector<1x32x96xf32>
    %27 = vector.shape_cast %26 : vector<1x32x96xf32> to vector<32x96xf32>
    %cst_14 = arith.constant dense<0.000000e+00> : vector<16x96xf32>
    %28 = tpu.matmul %24, %27, %cst_14 {dimension_numbers = #tpu.dot_dimension_numbers<[1], [0], [0], [1], [0, 0, 1, 1], [], []>} : vector<16x32xf32>, vector<32x96xf32>, vector<16x96xf32> -> vector<16x96xf32>
    %c0_15 = arith.constant 0 : index
    %c0_16 = arith.constant 0 : index
    %c0_17 = arith.constant 0 : index
    %29 = vector.load %arg5[%c0_15, %c0_16, %c0_17] : memref<2x1x96xf32, #tpu.memory_space<vmem>>, vector<1x1x96xf32>
    %30 = vector.shape_cast %29 : vector<1x1x96xf32> to vector<1x96xf32>
    %31 = vector.broadcast %30 : vector<1x96xf32> to vector<16x96xf32>
    %32 = arith.addf %28, %31 : vector<16x96xf32>
    %33 = vector.extract_strided_slice %32 {offsets = [0, 0], sizes = [16, 32], strides = [1, 1]} : vector<16x96xf32> to vector<16x32xf32>
    %34 = vector.extract_strided_slice %32 {offsets = [0, 32], sizes = [16, 32], strides = [1, 1]} : vector<16x96xf32> to vector<16x32xf32>
    %35 = vector.extract_strided_slice %32 {offsets = [0, 64], sizes = [16, 32], strides = [1, 1]} : vector<16x96xf32> to vector<16x32xf32>
    %36 = vector.extract_strided_slice %25 {offsets = [0, 0], sizes = [1, 8], strides = [1, 1]} : vector<2x8xf32> to vector<1x8xf32>
    %37 = vector.extract_strided_slice %33 {offsets = [0, 0], sizes = [8, 16], strides = [1, 1]} : vector<16x32xf32> to vector<8x16xf32>
    %38 = vector.extract_strided_slice %34 {offsets = [0, 0], sizes = [8, 16], strides = [1, 1]} : vector<16x32xf32> to vector<8x16xf32>
    %39 = vector.extract_strided_slice %35 {offsets = [0, 0], sizes = [8, 16], strides = [1, 1]} : vector<16x32xf32> to vector<8x16xf32>
    %cst_18 = arith.constant dense<0.000000e+00> : vector<8x8xf32>
    %40 = tpu.matmul %37, %38, %cst_18 {dimension_numbers = #tpu.dot_dimension_numbers<[1], [1], [0], [0], [0, 0, 1, 0], [], []>} : vector<8x16xf32>, vector<8x16xf32>, vector<8x8xf32> -> vector<8x8xf32>
    %cst_19 = arith.constant 2.500000e-01 : f32
    %41 = vector.broadcast %cst_19 : f32 to vector<8x8xf32>
    %42 = arith.mulf %40, %41 : vector<8x8xf32>
    %43 = vector.broadcast %36 : vector<1x8xf32> to vector<8x8xf32>
    %44 = arith.addf %42, %43 : vector<8x8xf32>
    %cst_20 = arith.constant dense<0xFF800000> : vector<8xf32>
    %45 = vector.multi_reduction <maximumf>, %44, %cst_20 [1] : vector<8x8xf32> to vector<8xf32>
    %cst_21 = arith.constant 0xFF800000 : f32
    %46 = vector.broadcast %cst_21 : f32 to vector<8xf32>
    %47 = arith.maximumf %46, %45 : vector<8xf32>
    %48 = vector.shape_cast %47 : vector<8xf32> to vector<8x1xf32>
    %49 = vector.broadcast %48 : vector<8x1xf32> to vector<8x8xf32>
    %50 = arith.subf %44, %49 : vector<8x8xf32>
    %51 = math.exp %50 : vector<8x8xf32>
    %cst_22 = arith.constant dense<0.000000e+00> : vector<8xf32>
    %52 = vector.multi_reduction <add>, %51, %cst_22 [1] : vector<8x8xf32> to vector<8xf32>
    %53 = vector.shape_cast %52 : vector<8xf32> to vector<8x1xf32>
    %54 = vector.broadcast %53 : vector<8x1xf32> to vector<8x8xf32>
    %55 = arith.divf %51, %54 : vector<8x8xf32>
    %cst_23 = arith.constant dense<0.000000e+00> : vector<8x16xf32>
    %56 = tpu.matmul %55, %39, %cst_23 {dimension_numbers = #tpu.dot_dimension_numbers<[1], [0], [0], [1], [0, 0, 1, 1], [], []>} : vector<8x8xf32>, vector<8x16xf32>, vector<8x16xf32> -> vector<8x16xf32>
    %57 = vector.extract_strided_slice %33 {offsets = [0, 16], sizes = [8, 16], strides = [1, 1]} : vector<16x32xf32> to vector<8x16xf32>
    %58 = vector.extract_strided_slice %34 {offsets = [0, 16], sizes = [8, 16], strides = [1, 1]} : vector<16x32xf32> to vector<8x16xf32>
    %59 = vector.extract_strided_slice %35 {offsets = [0, 16], sizes = [8, 16], strides = [1, 1]} : vector<16x32xf32> to vector<8x16xf32>
    %cst_24 = arith.constant dense<0.000000e+00> : vector<8x8xf32>
    %60 = tpu.matmul %57, %58, %cst_24 {dimension_numbers = #tpu.dot_dimension_numbers<[1], [1], [0], [0], [0, 0, 1, 0], [], []>} : vector<8x16xf32>, vector<8x16xf32>, vector<8x8xf32> -> vector<8x8xf32>
    %cst_25 = arith.constant 2.500000e-01 : f32
    %61 = vector.broadcast %cst_25 : f32 to vector<8x8xf32>
    %62 = arith.mulf %60, %61 : vector<8x8xf32>
    %63 = vector.broadcast %36 : vector<1x8xf32> to vector<8x8xf32>
    %64 = arith.addf %62, %63 : vector<8x8xf32>
    %cst_26 = arith.constant dense<0xFF800000> : vector<8xf32>
    %65 = vector.multi_reduction <maximumf>, %64, %cst_26 [1] : vector<8x8xf32> to vector<8xf32>
    %cst_27 = arith.constant 0xFF800000 : f32
    %66 = vector.broadcast %cst_27 : f32 to vector<8xf32>
    %67 = arith.maximumf %66, %65 : vector<8xf32>
    %68 = vector.shape_cast %67 : vector<8xf32> to vector<8x1xf32>
    %69 = vector.broadcast %68 : vector<8x1xf32> to vector<8x8xf32>
    %70 = arith.subf %64, %69 : vector<8x8xf32>
    %71 = math.exp %70 : vector<8x8xf32>
    %cst_28 = arith.constant dense<0.000000e+00> : vector<8xf32>
    %72 = vector.multi_reduction <add>, %71, %cst_28 [1] : vector<8x8xf32> to vector<8xf32>
    %73 = vector.shape_cast %72 : vector<8xf32> to vector<8x1xf32>
    %74 = vector.broadcast %73 : vector<8x1xf32> to vector<8x8xf32>
    %75 = arith.divf %71, %74 : vector<8x8xf32>
    %cst_29 = arith.constant dense<0.000000e+00> : vector<8x16xf32>
    %76 = tpu.matmul %75, %59, %cst_29 {dimension_numbers = #tpu.dot_dimension_numbers<[1], [0], [0], [1], [0, 0, 1, 1], [], []>} : vector<8x8xf32>, vector<8x16xf32>, vector<8x16xf32> -> vector<8x16xf32>
    %77 = tpu.concatenate %56, %76 in 1 : vector<8x16xf32>, vector<8x16xf32> -> vector<8x32xf32>
    %78 = vector.extract_strided_slice %25 {offsets = [1, 0], sizes = [1, 8], strides = [1, 1]} : vector<2x8xf32> to vector<1x8xf32>
    %79 = vector.extract_strided_slice %33 {offsets = [8, 0], sizes = [8, 16], strides = [1, 1]} : vector<16x32xf32> to vector<8x16xf32>
    %80 = vector.extract_strided_slice %34 {offsets = [8, 0], sizes = [8, 16], strides = [1, 1]} : vector<16x32xf32> to vector<8x16xf32>
    %81 = vector.extract_strided_slice %35 {offsets = [8, 0], sizes = [8, 16], strides = [1, 1]} : vector<16x32xf32> to vector<8x16xf32>
    %cst_30 = arith.constant dense<0.000000e+00> : vector<8x8xf32>
    %82 = tpu.matmul %79, %80, %cst_30 {dimension_numbers = #tpu.dot_dimension_numbers<[1], [1], [0], [0], [0, 0, 1, 0], [], []>} : vector<8x16xf32>, vector<8x16xf32>, vector<8x8xf32> -> vector<8x8xf32>
    %cst_31 = arith.constant 2.500000e-01 : f32
    %83 = vector.broadcast %cst_31 : f32 to vector<8x8xf32>
    %84 = arith.mulf %82, %83 : vector<8x8xf32>
    %85 = vector.broadcast %78 : vector<1x8xf32> to vector<8x8xf32>
    %86 = arith.addf %84, %85 : vector<8x8xf32>
    %cst_32 = arith.constant dense<0xFF800000> : vector<8xf32>
    %87 = vector.multi_reduction <maximumf>, %86, %cst_32 [1] : vector<8x8xf32> to vector<8xf32>
    %cst_33 = arith.constant 0xFF800000 : f32
    %88 = vector.broadcast %cst_33 : f32 to vector<8xf32>
    %89 = arith.maximumf %88, %87 : vector<8xf32>
    %90 = vector.shape_cast %89 : vector<8xf32> to vector<8x1xf32>
    %91 = vector.broadcast %90 : vector<8x1xf32> to vector<8x8xf32>
    %92 = arith.subf %86, %91 : vector<8x8xf32>
    %93 = math.exp %92 : vector<8x8xf32>
    %cst_34 = arith.constant dense<0.000000e+00> : vector<8xf32>
    %94 = vector.multi_reduction <add>, %93, %cst_34 [1] : vector<8x8xf32> to vector<8xf32>
    %95 = vector.shape_cast %94 : vector<8xf32> to vector<8x1xf32>
    %96 = vector.broadcast %95 : vector<8x1xf32> to vector<8x8xf32>
    %97 = arith.divf %93, %96 : vector<8x8xf32>
    %cst_35 = arith.constant dense<0.000000e+00> : vector<8x16xf32>
    %98 = tpu.matmul %97, %81, %cst_35 {dimension_numbers = #tpu.dot_dimension_numbers<[1], [0], [0], [1], [0, 0, 1, 1], [], []>} : vector<8x8xf32>, vector<8x16xf32>, vector<8x16xf32> -> vector<8x16xf32>
    %99 = vector.extract_strided_slice %33 {offsets = [8, 16], sizes = [8, 16], strides = [1, 1]} : vector<16x32xf32> to vector<8x16xf32>
    %100 = vector.extract_strided_slice %34 {offsets = [8, 16], sizes = [8, 16], strides = [1, 1]} : vector<16x32xf32> to vector<8x16xf32>
    %101 = vector.extract_strided_slice %35 {offsets = [8, 16], sizes = [8, 16], strides = [1, 1]} : vector<16x32xf32> to vector<8x16xf32>
    %cst_36 = arith.constant dense<0.000000e+00> : vector<8x8xf32>
    %102 = tpu.matmul %99, %100, %cst_36 {dimension_numbers = #tpu.dot_dimension_numbers<[1], [1], [0], [0], [0, 0, 1, 0], [], []>} : vector<8x16xf32>, vector<8x16xf32>, vector<8x8xf32> -> vector<8x8xf32>
    %cst_37 = arith.constant 2.500000e-01 : f32
    %103 = vector.broadcast %cst_37 : f32 to vector<8x8xf32>
    %104 = arith.mulf %102, %103 : vector<8x8xf32>
    %105 = vector.broadcast %78 : vector<1x8xf32> to vector<8x8xf32>
    %106 = arith.addf %104, %105 : vector<8x8xf32>
    %cst_38 = arith.constant dense<0xFF800000> : vector<8xf32>
    %107 = vector.multi_reduction <maximumf>, %106, %cst_38 [1] : vector<8x8xf32> to vector<8xf32>
    %cst_39 = arith.constant 0xFF800000 : f32
    %108 = vector.broadcast %cst_39 : f32 to vector<8xf32>
    %109 = arith.maximumf %108, %107 : vector<8xf32>
    %110 = vector.shape_cast %109 : vector<8xf32> to vector<8x1xf32>
    %111 = vector.broadcast %110 : vector<8x1xf32> to vector<8x8xf32>
    %112 = arith.subf %106, %111 : vector<8x8xf32>
    %113 = math.exp %112 : vector<8x8xf32>
    %cst_40 = arith.constant dense<0.000000e+00> : vector<8xf32>
    %114 = vector.multi_reduction <add>, %113, %cst_40 [1] : vector<8x8xf32> to vector<8xf32>
    %115 = vector.shape_cast %114 : vector<8xf32> to vector<8x1xf32>
    %116 = vector.broadcast %115 : vector<8x1xf32> to vector<8x8xf32>
    %117 = arith.divf %113, %116 : vector<8x8xf32>
    %cst_41 = arith.constant dense<0.000000e+00> : vector<8x16xf32>
    %118 = tpu.matmul %117, %101, %cst_41 {dimension_numbers = #tpu.dot_dimension_numbers<[1], [0], [0], [1], [0, 0, 1, 1], [], []>} : vector<8x8xf32>, vector<8x16xf32>, vector<8x16xf32> -> vector<8x16xf32>
    %119 = tpu.concatenate %98, %118 in 1 : vector<8x16xf32>, vector<8x16xf32> -> vector<8x32xf32>
    %120 = tpu.concatenate %77, %119 in 0 : vector<8x32xf32>, vector<8x32xf32> -> vector<16x32xf32>
    %c0_42 = arith.constant 0 : index
    %c0_43 = arith.constant 0 : index
    %c0_44 = arith.constant 0 : index
    %121 = vector.load %arg6[%c0_42, %c0_43, %c0_44] : memref<2x32x32xf32, #tpu.memory_space<vmem>>, vector<1x32x32xf32>
    %122 = vector.shape_cast %121 : vector<1x32x32xf32> to vector<32x32xf32>
    %cst_45 = arith.constant dense<0.000000e+00> : vector<16x32xf32>
    %123 = tpu.matmul %120, %122, %cst_45 {dimension_numbers = #tpu.dot_dimension_numbers<[1], [0], [0], [1], [0, 0, 1, 1], [], []>} : vector<16x32xf32>, vector<32x32xf32>, vector<16x32xf32> -> vector<16x32xf32>
    %c0_46 = arith.constant 0 : index
    %c0_47 = arith.constant 0 : index
    %c0_48 = arith.constant 0 : index
    %124 = vector.load %arg7[%c0_46, %c0_47, %c0_48] : memref<2x1x32xf32, #tpu.memory_space<vmem>>, vector<1x1x32xf32>
    %125 = vector.shape_cast %124 : vector<1x1x32xf32> to vector<1x32xf32>
    %126 = vector.broadcast %125 : vector<1x32xf32> to vector<16x32xf32>
    %127 = arith.addf %123, %126 : vector<16x32xf32>
    %128 = arith.addf %127, %24 : vector<16x32xf32>
    %c0_49 = arith.constant 0 : index
    %c0_50 = arith.constant 0 : index
    %c0_51 = arith.constant 0 : index
    %129 = vector.load %arg8[%c0_49, %c0_50, %c0_51] : memref<2x1x32xf32, #tpu.memory_space<vmem>>, vector<1x1x32xf32>
    %130 = vector.shape_cast %129 : vector<1x1x32xf32> to vector<1x32xf32>
    %c0_52 = arith.constant 0 : index
    %c0_53 = arith.constant 0 : index
    %c0_54 = arith.constant 0 : index
    %131 = vector.load %arg9[%c0_52, %c0_53, %c0_54] : memref<2x1x32xf32, #tpu.memory_space<vmem>>, vector<1x1x32xf32>
    %132 = vector.shape_cast %131 : vector<1x1x32xf32> to vector<1x32xf32>
    %cst_55 = arith.constant dense<0.000000e+00> : vector<16xf32>
    %133 = vector.multi_reduction <add>, %128, %cst_55 [1] : vector<16x32xf32> to vector<16xf32>
    %134 = vector.shape_cast %133 : vector<16xf32> to vector<16x1xf32>
    %cst_56 = arith.constant 3.200000e+01 : f32
    %135 = vector.broadcast %cst_56 : f32 to vector<16x1xf32>
    %136 = arith.divf %134, %135 : vector<16x1xf32>
    %137 = vector.broadcast %136 : vector<16x1xf32> to vector<16x32xf32>
    %138 = arith.subf %128, %137 : vector<16x32xf32>
    %139 = arith.mulf %138, %138 : vector<16x32xf32>
    %cst_57 = arith.constant dense<0.000000e+00> : vector<16xf32>
    %140 = vector.multi_reduction <add>, %139, %cst_57 [1] : vector<16x32xf32> to vector<16xf32>
    %141 = vector.shape_cast %140 : vector<16xf32> to vector<16x1xf32>
    %cst_58 = arith.constant 3.200000e+01 : f32
    %142 = vector.broadcast %cst_58 : f32 to vector<16x1xf32>
    %143 = arith.divf %141, %142 : vector<16x1xf32>
    %144 = vector.broadcast %136 : vector<16x1xf32> to vector<16x32xf32>
    %145 = arith.subf %128, %144 : vector<16x32xf32>
    %cst_59 = arith.constant 9.99999996E-13 : f32
    %146 = vector.broadcast %cst_59 : f32 to vector<16x1xf32>
    %147 = arith.addf %143, %146 : vector<16x1xf32>
    %148 = math.rsqrt %147 : vector<16x1xf32>
    %149 = vector.broadcast %148 : vector<16x1xf32> to vector<16x32xf32>
    %150 = arith.mulf %145, %149 : vector<16x32xf32>
    %151 = vector.broadcast %130 : vector<1x32xf32> to vector<16x32xf32>
    %152 = arith.mulf %150, %151 : vector<16x32xf32>
    %153 = vector.broadcast %132 : vector<1x32xf32> to vector<16x32xf32>
    %154 = arith.addf %152, %153 : vector<16x32xf32>
    %c0_60 = arith.constant 0 : index
    %c0_61 = arith.constant 0 : index
    %c0_62 = arith.constant 0 : index
    %155 = vector.load %arg10[%c0_60, %c0_61, %c0_62] : memref<2x32x64xf32, #tpu.memory_space<vmem>>, vector<1x32x64xf32>
    %156 = vector.shape_cast %155 : vector<1x32x64xf32> to vector<32x64xf32>
    %cst_63 = arith.constant dense<0.000000e+00> : vector<16x64xf32>
    %157 = tpu.matmul %154, %156, %cst_63 {dimension_numbers = #tpu.dot_dimension_numbers<[1], [0], [0], [1], [0, 0, 1, 1], [], []>} : vector<16x32xf32>, vector<32x64xf32>, vector<16x64xf32> -> vector<16x64xf32>
    %c0_64 = arith.constant 0 : index
    %c0_65 = arith.constant 0 : index
    %c0_66 = arith.constant 0 : index
    %158 = vector.load %arg11[%c0_64, %c0_65, %c0_66] : memref<2x1x64xf32, #tpu.memory_space<vmem>>, vector<1x1x64xf32>
    %159 = vector.shape_cast %158 : vector<1x1x64xf32> to vector<1x64xf32>
    %160 = vector.broadcast %159 : vector<1x64xf32> to vector<16x64xf32>
    %161 = arith.addf %157, %160 : vector<16x64xf32>
    %162 = arith.mulf %161, %161 : vector<16x64xf32>
    %163 = arith.mulf %161, %162 : vector<16x64xf32>
    %cst_67 = arith.constant 4.471500e-02 : f32
    %164 = vector.broadcast %cst_67 : f32 to vector<16x64xf32>
    %165 = arith.mulf %164, %163 : vector<16x64xf32>
    %166 = arith.addf %161, %165 : vector<16x64xf32>
    %cst_68 = arith.constant 0.797884583 : f32
    %167 = vector.broadcast %cst_68 : f32 to vector<16x64xf32>
    %168 = arith.mulf %167, %166 : vector<16x64xf32>
    %169 = math.tanh %168 : vector<16x64xf32>
    %cst_69 = arith.constant 1.000000e+00 : f32
    %170 = vector.broadcast %cst_69 : f32 to vector<16x64xf32>
    %171 = arith.addf %170, %169 : vector<16x64xf32>
    %cst_70 = arith.constant 5.000000e-01 : f32
    %172 = vector.broadcast %cst_70 : f32 to vector<16x64xf32>
    %173 = arith.mulf %172, %171 : vector<16x64xf32>
    %174 = arith.mulf %161, %173 : vector<16x64xf32>
    %c0_71 = arith.constant 0 : index
    %c0_72 = arith.constant 0 : index
    %c0_73 = arith.constant 0 : index
    %175 = vector.load %arg12[%c0_71, %c0_72, %c0_73] : memref<2x64x32xf32, #tpu.memory_space<vmem>>, vector<1x64x32xf32>
    %176 = vector.shape_cast %175 : vector<1x64x32xf32> to vector<64x32xf32>
    %cst_74 = arith.constant dense<0.000000e+00> : vector<16x32xf32>
    %177 = tpu.matmul %174, %176, %cst_74 {dimension_numbers = #tpu.dot_dimension_numbers<[1], [0], [0], [1], [0, 0, 1, 1], [], []>} : vector<16x64xf32>, vector<64x32xf32>, vector<16x32xf32> -> vector<16x32xf32>
    %c0_75 = arith.constant 0 : index
    %c0_76 = arith.constant 0 : index
    %c0_77 = arith.constant 0 : index
    %178 = vector.load %arg13[%c0_75, %c0_76, %c0_77] : memref<2x1x32xf32, #tpu.memory_space<vmem>>, vector<1x1x32xf32>
    %179 = vector.shape_cast %178 : vector<1x1x32xf32> to vector<1x32xf32>
    %180 = vector.broadcast %179 : vector<1x32xf32> to vector<16x32xf32>
    %181 = arith.addf %177, %180 : vector<16x32xf32>
    %182 = arith.addf %181, %154 : vector<16x32xf32>
    %c0_78 = arith.constant 0 : index
    %c0_79 = arith.constant 0 : index
    %c0_80 = arith.constant 0 : index
    %183 = vector.load %arg14[%c0_78, %c0_79, %c0_80] : memref<2x1x32xf32, #tpu.memory_space<vmem>>, vector<1x1x32xf32>
    %184 = vector.shape_cast %183 : vector<1x1x32xf32> to vector<1x32xf32>
    %c0_81 = arith.constant 0 : index
    %c0_82 = arith.constant 0 : index
    %c0_83 = arith.constant 0 : index
    %185 = vector.load %arg15[%c0_81, %c0_82, %c0_83] : memref<2x1x32xf32, #tpu.memory_space<vmem>>, vector<1x1x32xf32>
    %186 = vector.shape_cast %185 : vector<1x1x32xf32> to vector<1x32xf32>
    %cst_84 = arith.constant dense<0.000000e+00> : vector<16xf32>
    %187 = vector.multi_reduction <add>, %182, %cst_84 [1] : vector<16x32xf32> to vector<16xf32>
    %188 = vector.shape_cast %187 : vector<16xf32> to vector<16x1xf32>
    %cst_85 = arith.constant 3.200000e+01 : f32
    %189 = vector.broadcast %cst_85 : f32 to vector<16x1xf32>
    %190 = arith.divf %188, %189 : vector<16x1xf32>
    %191 = vector.broadcast %190 : vector<16x1xf32> to vector<16x32xf32>
    %192 = arith.subf %182, %191 : vector<16x32xf32>
    %193 = arith.mulf %192, %192 : vector<16x32xf32>
    %cst_86 = arith.constant dense<0.000000e+00> : vector<16xf32>
    %194 = vector.multi_reduction <add>, %193, %cst_86 [1] : vector<16x32xf32> to vector<16xf32>
    %195 = vector.shape_cast %194 : vector<16xf32> to vector<16x1xf32>
    %cst_87 = arith.constant 3.200000e+01 : f32
    %196 = vector.broadcast %cst_87 : f32 to vector<16x1xf32>
    %197 = arith.divf %195, %196 : vector<16x1xf32>
    %198 = vector.broadcast %190 : vector<16x1xf32> to vector<16x32xf32>
    %199 = arith.subf %182, %198 : vector<16x32xf32>
    %cst_88 = arith.constant 9.99999996E-13 : f32
    %200 = vector.broadcast %cst_88 : f32 to vector<16x1xf32>
    %201 = arith.addf %197, %200 : vector<16x1xf32>
    %202 = math.rsqrt %201 : vector<16x1xf32>
    %203 = vector.broadcast %202 : vector<16x1xf32> to vector<16x32xf32>
    %204 = arith.mulf %199, %203 : vector<16x32xf32>
    %205 = vector.broadcast %184 : vector<1x32xf32> to vector<16x32xf32>
    %206 = arith.mulf %204, %205 : vector<16x32xf32>
    %207 = vector.broadcast %186 : vector<1x32xf32> to vector<16x32xf32>
    %208 = arith.addf %206, %207 : vector<16x32xf32>
    %c1 = arith.constant 1 : index
    %c0_89 = arith.constant 0 : index
    %c0_90 = arith.constant 0 : index
    %209 = vector.load %arg4[%c1, %c0_89, %c0_90] : memref<2x32x96xf32, #tpu.memory_space<vmem>>, vector<1x32x96xf32>
    %210 = vector.shape_cast %209 : vector<1x32x96xf32> to vector<32x96xf32>
    %cst_91 = arith.constant dense<0.000000e+00> : vector<16x96xf32>
    %211 = tpu.matmul %208, %210, %cst_91 {dimension_numbers = #tpu.dot_dimension_numbers<[1], [0], [0], [1], [0, 0, 1, 1], [], []>} : vector<16x32xf32>, vector<32x96xf32>, vector<16x96xf32> -> vector<16x96xf32>
    %c1_92 = arith.constant 1 : index
    %c0_93 = arith.constant 0 : index
    %c0_94 = arith.constant 0 : index
    %212 = vector.load %arg5[%c1_92, %c0_93, %c0_94] : memref<2x1x96xf32, #tpu.memory_space<vmem>>, vector<1x1x96xf32>
    %213 = vector.shape_cast %212 : vector<1x1x96xf32> to vector<1x96xf32>
    %214 = vector.broadcast %213 : vector<1x96xf32> to vector<16x96xf32>
    %215 = arith.addf %211, %214 : vector<16x96xf32>
    %216 = vector.extract_strided_slice %215 {offsets = [0, 0], sizes = [16, 32], strides = [1, 1]} : vector<16x96xf32> to vector<16x32xf32>
    %217 = vector.extract_strided_slice %215 {offsets = [0, 32], sizes = [16, 32], strides = [1, 1]} : vector<16x96xf32> to vector<16x32xf32>
    %218 = vector.extract_strided_slice %215 {offsets = [0, 64], sizes = [16, 32], strides = [1, 1]} : vector<16x96xf32> to vector<16x32xf32>
    %219 = vector.extract_strided_slice %25 {offsets = [0, 0], sizes = [1, 8], strides = [1, 1]} : vector<2x8xf32> to vector<1x8xf32>
    %220 = vector.extract_strided_slice %216 {offsets = [0, 0], sizes = [8, 16], strides = [1, 1]} : vector<16x32xf32> to vector<8x16xf32>
    %221 = vector.extract_strided_slice %217 {offsets = [0, 0], sizes = [8, 16], strides = [1, 1]} : vector<16x32xf32> to vector<8x16xf32>
    %222 = vector.extract_strided_slice %218 {offsets = [0, 0], sizes = [8, 16], strides = [1, 1]} : vector<16x32xf32> to vector<8x16xf32>
    %cst_95 = arith.constant dense<0.000000e+00> : vector<8x8xf32>
    %223 = tpu.matmul %220, %221, %cst_95 {dimension_numbers = #tpu.dot_dimension_numbers<[1], [1], [0], [0], [0, 0, 1, 0], [], []>} : vector<8x16xf32>, vector<8x16xf32>, vector<8x8xf32> -> vector<8x8xf32>
    %cst_96 = arith.constant 2.500000e-01 : f32
    %224 = vector.broadcast %cst_96 : f32 to vector<8x8xf32>
    %225 = arith.mulf %223, %224 : vector<8x8xf32>
    %226 = vector.broadcast %219 : vector<1x8xf32> to vector<8x8xf32>
    %227 = arith.addf %225, %226 : vector<8x8xf32>
    %cst_97 = arith.constant dense<0xFF800000> : vector<8xf32>
    %228 = vector.multi_reduction <maximumf>, %227, %cst_97 [1] : vector<8x8xf32> to vector<8xf32>
    %cst_98 = arith.constant 0xFF800000 : f32
    %229 = vector.broadcast %cst_98 : f32 to vector<8xf32>
    %230 = arith.maximumf %229, %228 : vector<8xf32>
    %231 = vector.shape_cast %230 : vector<8xf32> to vector<8x1xf32>
    %232 = vector.broadcast %231 : vector<8x1xf32> to vector<8x8xf32>
    %233 = arith.subf %227, %232 : vector<8x8xf32>
    %234 = math.exp %233 : vector<8x8xf32>
    %cst_99 = arith.constant dense<0.000000e+00> : vector<8xf32>
    %235 = vector.multi_reduction <add>, %234, %cst_99 [1] : vector<8x8xf32> to vector<8xf32>
    %236 = vector.shape_cast %235 : vector<8xf32> to vector<8x1xf32>
    %237 = vector.broadcast %236 : vector<8x1xf32> to vector<8x8xf32>
    %238 = arith.divf %234, %237 : vector<8x8xf32>
    %cst_100 = arith.constant dense<0.000000e+00> : vector<8x16xf32>
    %239 = tpu.matmul %238, %222, %cst_100 {dimension_numbers = #tpu.dot_dimension_numbers<[1], [0], [0], [1], [0, 0, 1, 1], [], []>} : vector<8x8xf32>, vector<8x16xf32>, vector<8x16xf32> -> vector<8x16xf32>
    %240 = vector.extract_strided_slice %216 {offsets = [0, 16], sizes = [8, 16], strides = [1, 1]} : vector<16x32xf32> to vector<8x16xf32>
    %241 = vector.extract_strided_slice %217 {offsets = [0, 16], sizes = [8, 16], strides = [1, 1]} : vector<16x32xf32> to vector<8x16xf32>
    %242 = vector.extract_strided_slice %218 {offsets = [0, 16], sizes = [8, 16], strides = [1, 1]} : vector<16x32xf32> to vector<8x16xf32>
    %cst_101 = arith.constant dense<0.000000e+00> : vector<8x8xf32>
    %243 = tpu.matmul %240, %241, %cst_101 {dimension_numbers = #tpu.dot_dimension_numbers<[1], [1], [0], [0], [0, 0, 1, 0], [], []>} : vector<8x16xf32>, vector<8x16xf32>, vector<8x8xf32> -> vector<8x8xf32>
    %cst_102 = arith.constant 2.500000e-01 : f32
    %244 = vector.broadcast %cst_102 : f32 to vector<8x8xf32>
    %245 = arith.mulf %243, %244 : vector<8x8xf32>
    %246 = vector.broadcast %219 : vector<1x8xf32> to vector<8x8xf32>
    %247 = arith.addf %245, %246 : vector<8x8xf32>
    %cst_103 = arith.constant dense<0xFF800000> : vector<8xf32>
    %248 = vector.multi_reduction <maximumf>, %247, %cst_103 [1] : vector<8x8xf32> to vector<8xf32>
    %cst_104 = arith.constant 0xFF800000 : f32
    %249 = vector.broadcast %cst_104 : f32 to vector<8xf32>
    %250 = arith.maximumf %249, %248 : vector<8xf32>
    %251 = vector.shape_cast %250 : vector<8xf32> to vector<8x1xf32>
    %252 = vector.broadcast %251 : vector<8x1xf32> to vector<8x8xf32>
    %253 = arith.subf %247, %252 : vector<8x8xf32>
    %254 = math.exp %253 : vector<8x8xf32>
    %cst_105 = arith.constant dense<0.000000e+00> : vector<8xf32>
    %255 = vector.multi_reduction <add>, %254, %cst_105 [1] : vector<8x8xf32> to vector<8xf32>
    %256 = vector.shape_cast %255 : vector<8xf32> to vector<8x1xf32>
    %257 = vector.broadcast %256 : vector<8x1xf32> to vector<8x8xf32>
    %258 = arith.divf %254, %257 : vector<8x8xf32>
    %cst_106 = arith.constant dense<0.000000e+00> : vector<8x16xf32>
    %259 = tpu.matmul %258, %242, %cst_106 {dimension_numbers = #tpu.dot_dimension_numbers<[1], [0], [0], [1], [0, 0, 1, 1], [], []>} : vector<8x8xf32>, vector<8x16xf32>, vector<8x16xf32> -> vector<8x16xf32>
    %260 = tpu.concatenate %239, %259 in 1 : vector<8x16xf32>, vector<8x16xf32> -> vector<8x32xf32>
    %261 = vector.extract_strided_slice %25 {offsets = [1, 0], sizes = [1, 8], strides = [1, 1]} : vector<2x8xf32> to vector<1x8xf32>
    %262 = vector.extract_strided_slice %216 {offsets = [8, 0], sizes = [8, 16], strides = [1, 1]} : vector<16x32xf32> to vector<8x16xf32>
    %263 = vector.extract_strided_slice %217 {offsets = [8, 0], sizes = [8, 16], strides = [1, 1]} : vector<16x32xf32> to vector<8x16xf32>
    %264 = vector.extract_strided_slice %218 {offsets = [8, 0], sizes = [8, 16], strides = [1, 1]} : vector<16x32xf32> to vector<8x16xf32>
    %cst_107 = arith.constant dense<0.000000e+00> : vector<8x8xf32>
    %265 = tpu.matmul %262, %263, %cst_107 {dimension_numbers = #tpu.dot_dimension_numbers<[1], [1], [0], [0], [0, 0, 1, 0], [], []>} : vector<8x16xf32>, vector<8x16xf32>, vector<8x8xf32> -> vector<8x8xf32>
    %cst_108 = arith.constant 2.500000e-01 : f32
    %266 = vector.broadcast %cst_108 : f32 to vector<8x8xf32>
    %267 = arith.mulf %265, %266 : vector<8x8xf32>
    %268 = vector.broadcast %261 : vector<1x8xf32> to vector<8x8xf32>
    %269 = arith.addf %267, %268 : vector<8x8xf32>
    %cst_109 = arith.constant dense<0xFF800000> : vector<8xf32>
    %270 = vector.multi_reduction <maximumf>, %269, %cst_109 [1] : vector<8x8xf32> to vector<8xf32>
    %cst_110 = arith.constant 0xFF800000 : f32
    %271 = vector.broadcast %cst_110 : f32 to vector<8xf32>
    %272 = arith.maximumf %271, %270 : vector<8xf32>
    %273 = vector.shape_cast %272 : vector<8xf32> to vector<8x1xf32>
    %274 = vector.broadcast %273 : vector<8x1xf32> to vector<8x8xf32>
    %275 = arith.subf %269, %274 : vector<8x8xf32>
    %276 = math.exp %275 : vector<8x8xf32>
    %cst_111 = arith.constant dense<0.000000e+00> : vector<8xf32>
    %277 = vector.multi_reduction <add>, %276, %cst_111 [1] : vector<8x8xf32> to vector<8xf32>
    %278 = vector.shape_cast %277 : vector<8xf32> to vector<8x1xf32>
    %279 = vector.broadcast %278 : vector<8x1xf32> to vector<8x8xf32>
    %280 = arith.divf %276, %279 : vector<8x8xf32>
    %cst_112 = arith.constant dense<0.000000e+00> : vector<8x16xf32>
    %281 = tpu.matmul %280, %264, %cst_112 {dimension_numbers = #tpu.dot_dimension_numbers<[1], [0], [0], [1], [0, 0, 1, 1], [], []>} : vector<8x8xf32>, vector<8x16xf32>, vector<8x16xf32> -> vector<8x16xf32>
    %282 = vector.extract_strided_slice %216 {offsets = [8, 16], sizes = [8, 16], strides = [1, 1]} : vector<16x32xf32> to vector<8x16xf32>
    %283 = vector.extract_strided_slice %217 {offsets = [8, 16], sizes = [8, 16], strides = [1, 1]} : vector<16x32xf32> to vector<8x16xf32>
    %284 = vector.extract_strided_slice %218 {offsets = [8, 16], sizes = [8, 16], strides = [1, 1]} : vector<16x32xf32> to vector<8x16xf32>
    %cst_113 = arith.constant dense<0.000000e+00> : vector<8x8xf32>
    %285 = tpu.matmul %282, %283, %cst_113 {dimension_numbers = #tpu.dot_dimension_numbers<[1], [1], [0], [0], [0, 0, 1, 0], [], []>} : vector<8x16xf32>, vector<8x16xf32>, vector<8x8xf32> -> vector<8x8xf32>
    %cst_114 = arith.constant 2.500000e-01 : f32
    %286 = vector.broadcast %cst_114 : f32 to vector<8x8xf32>
    %287 = arith.mulf %285, %286 : vector<8x8xf32>
    %288 = vector.broadcast %261 : vector<1x8xf32> to vector<8x8xf32>
    %289 = arith.addf %287, %288 : vector<8x8xf32>
    %cst_115 = arith.constant dense<0xFF800000> : vector<8xf32>
    %290 = vector.multi_reduction <maximumf>, %289, %cst_115 [1] : vector<8x8xf32> to vector<8xf32>
    %cst_116 = arith.constant 0xFF800000 : f32
    %291 = vector.broadcast %cst_116 : f32 to vector<8xf32>
    %292 = arith.maximumf %291, %290 : vector<8xf32>
    %293 = vector.shape_cast %292 : vector<8xf32> to vector<8x1xf32>
    %294 = vector.broadcast %293 : vector<8x1xf32> to vector<8x8xf32>
    %295 = arith.subf %289, %294 : vector<8x8xf32>
    %296 = math.exp %295 : vector<8x8xf32>
    %cst_117 = arith.constant dense<0.000000e+00> : vector<8xf32>
    %297 = vector.multi_reduction <add>, %296, %cst_117 [1] : vector<8x8xf32> to vector<8xf32>
    %298 = vector.shape_cast %297 : vector<8xf32> to vector<8x1xf32>
    %299 = vector.broadcast %298 : vector<8x1xf32> to vector<8x8xf32>
    %300 = arith.divf %296, %299 : vector<8x8xf32>
    %cst_118 = arith.constant dense<0.000000e+00> : vector<8x16xf32>
    %301 = tpu.matmul %300, %284, %cst_118 {dimension_numbers = #tpu.dot_dimension_numbers<[1], [0], [0], [1], [0, 0, 1, 1], [], []>} : vector<8x8xf32>, vector<8x16xf32>, vector<8x16xf32> -> vector<8x16xf32>
    %302 = tpu.concatenate %281, %301 in 1 : vector<8x16xf32>, vector<8x16xf32> -> vector<8x32xf32>
    %303 = tpu.concatenate %260, %302 in 0 : vector<8x32xf32>, vector<8x32xf32> -> vector<16x32xf32>
    %c1_119 = arith.constant 1 : index
    %c0_120 = arith.constant 0 : index
    %c0_121 = arith.constant 0 : index
    %304 = vector.load %arg6[%c1_119, %c0_120, %c0_121] : memref<2x32x32xf32, #tpu.memory_space<vmem>>, vector<1x32x32xf32>
    %305 = vector.shape_cast %304 : vector<1x32x32xf32> to vector<32x32xf32>
    %cst_122 = arith.constant dense<0.000000e+00> : vector<16x32xf32>
    %306 = tpu.matmul %303, %305, %cst_122 {dimension_numbers = #tpu.dot_dimension_numbers<[1], [0], [0], [1], [0, 0, 1, 1], [], []>} : vector<16x32xf32>, vector<32x32xf32>, vector<16x32xf32> -> vector<16x32xf32>
    %c1_123 = arith.constant 1 : index
    %c0_124 = arith.constant 0 : index
    %c0_125 = arith.constant 0 : index
    %307 = vector.load %arg7[%c1_123, %c0_124, %c0_125] : memref<2x1x32xf32, #tpu.memory_space<vmem>>, vector<1x1x32xf32>
    %308 = vector.shape_cast %307 : vector<1x1x32xf32> to vector<1x32xf32>
    %309 = vector.broadcast %308 : vector<1x32xf32> to vector<16x32xf32>
    %310 = arith.addf %306, %309 : vector<16x32xf32>
    %311 = arith.addf %310, %208 : vector<16x32xf32>
    %c1_126 = arith.constant 1 : index
    %c0_127 = arith.constant 0 : index
    %c0_128 = arith.constant 0 : index
    %312 = vector.load %arg8[%c1_126, %c0_127, %c0_128] : memref<2x1x32xf32, #tpu.memory_space<vmem>>, vector<1x1x32xf32>
    %313 = vector.shape_cast %312 : vector<1x1x32xf32> to vector<1x32xf32>
    %c1_129 = arith.constant 1 : index
    %c0_130 = arith.constant 0 : index
    %c0_131 = arith.constant 0 : index
    %314 = vector.load %arg9[%c1_129, %c0_130, %c0_131] : memref<2x1x32xf32, #tpu.memory_space<vmem>>, vector<1x1x32xf32>
    %315 = vector.shape_cast %314 : vector<1x1x32xf32> to vector<1x32xf32>
    %cst_132 = arith.constant dense<0.000000e+00> : vector<16xf32>
    %316 = vector.multi_reduction <add>, %311, %cst_132 [1] : vector<16x32xf32> to vector<16xf32>
    %317 = vector.shape_cast %316 : vector<16xf32> to vector<16x1xf32>
    %cst_133 = arith.constant 3.200000e+01 : f32
    %318 = vector.broadcast %cst_133 : f32 to vector<16x1xf32>
    %319 = arith.divf %317, %318 : vector<16x1xf32>
    %320 = vector.broadcast %319 : vector<16x1xf32> to vector<16x32xf32>
    %321 = arith.subf %311, %320 : vector<16x32xf32>
    %322 = arith.mulf %321, %321 : vector<16x32xf32>
    %cst_134 = arith.constant dense<0.000000e+00> : vector<16xf32>
    %323 = vector.multi_reduction <add>, %322, %cst_134 [1] : vector<16x32xf32> to vector<16xf32>
    %324 = vector.shape_cast %323 : vector<16xf32> to vector<16x1xf32>
    %cst_135 = arith.constant 3.200000e+01 : f32
    %325 = vector.broadcast %cst_135 : f32 to vector<16x1xf32>
    %326 = arith.divf %324, %325 : vector<16x1xf32>
    %327 = vector.broadcast %319 : vector<16x1xf32> to vector<16x32xf32>
    %328 = arith.subf %311, %327 : vector<16x32xf32>
    %cst_136 = arith.constant 9.99999996E-13 : f32
    %329 = vector.broadcast %cst_136 : f32 to vector<16x1xf32>
    %330 = arith.addf %326, %329 : vector<16x1xf32>
    %331 = math.rsqrt %330 : vector<16x1xf32>
    %332 = vector.broadcast %331 : vector<16x1xf32> to vector<16x32xf32>
    %333 = arith.mulf %328, %332 : vector<16x32xf32>
    %334 = vector.broadcast %313 : vector<1x32xf32> to vector<16x32xf32>
    %335 = arith.mulf %333, %334 : vector<16x32xf32>
    %336 = vector.broadcast %315 : vector<1x32xf32> to vector<16x32xf32>
    %337 = arith.addf %335, %336 : vector<16x32xf32>
    %c1_137 = arith.constant 1 : index
    %c0_138 = arith.constant 0 : index
    %c0_139 = arith.constant 0 : index
    %338 = vector.load %arg10[%c1_137, %c0_138, %c0_139] : memref<2x32x64xf32, #tpu.memory_space<vmem>>, vector<1x32x64xf32>
    %339 = vector.shape_cast %338 : vector<1x32x64xf32> to vector<32x64xf32>
    %cst_140 = arith.constant dense<0.000000e+00> : vector<16x64xf32>
    %340 = tpu.matmul %337, %339, %cst_140 {dimension_numbers = #tpu.dot_dimension_numbers<[1], [0], [0], [1], [0, 0, 1, 1], [], []>} : vector<16x32xf32>, vector<32x64xf32>, vector<16x64xf32> -> vector<16x64xf32>
    %c1_141 = arith.constant 1 : index
    %c0_142 = arith.constant 0 : index
    %c0_143 = arith.constant 0 : index
    %341 = vector.load %arg11[%c1_141, %c0_142, %c0_143] : memref<2x1x64xf32, #tpu.memory_space<vmem>>, vector<1x1x64xf32>
    %342 = vector.shape_cast %341 : vector<1x1x64xf32> to vector<1x64xf32>
    %343 = vector.broadcast %342 : vector<1x64xf32> to vector<16x64xf32>
    %344 = arith.addf %340, %343 : vector<16x64xf32>
    %345 = arith.mulf %344, %344 : vector<16x64xf32>
    %346 = arith.mulf %344, %345 : vector<16x64xf32>
    %cst_144 = arith.constant 4.471500e-02 : f32
    %347 = vector.broadcast %cst_144 : f32 to vector<16x64xf32>
    %348 = arith.mulf %347, %346 : vector<16x64xf32>
    %349 = arith.addf %344, %348 : vector<16x64xf32>
    %cst_145 = arith.constant 0.797884583 : f32
    %350 = vector.broadcast %cst_145 : f32 to vector<16x64xf32>
    %351 = arith.mulf %350, %349 : vector<16x64xf32>
    %352 = math.tanh %351 : vector<16x64xf32>
    %cst_146 = arith.constant 1.000000e+00 : f32
    %353 = vector.broadcast %cst_146 : f32 to vector<16x64xf32>
    %354 = arith.addf %353, %352 : vector<16x64xf32>
    %cst_147 = arith.constant 5.000000e-01 : f32
    %355 = vector.broadcast %cst_147 : f32 to vector<16x64xf32>
    %356 = arith.mulf %355, %354 : vector<16x64xf32>
    %357 = arith.mulf %344, %356 : vector<16x64xf32>
    %c1_148 = arith.constant 1 : index
    %c0_149 = arith.constant 0 : index
    %c0_150 = arith.constant 0 : index
    %358 = vector.load %arg12[%c1_148, %c0_149, %c0_150] : memref<2x64x32xf32, #tpu.memory_space<vmem>>, vector<1x64x32xf32>
    %359 = vector.shape_cast %358 : vector<1x64x32xf32> to vector<64x32xf32>
    %cst_151 = arith.constant dense<0.000000e+00> : vector<16x32xf32>
    %360 = tpu.matmul %357, %359, %cst_151 {dimension_numbers = #tpu.dot_dimension_numbers<[1], [0], [0], [1], [0, 0, 1, 1], [], []>} : vector<16x64xf32>, vector<64x32xf32>, vector<16x32xf32> -> vector<16x32xf32>
    %c1_152 = arith.constant 1 : index
    %c0_153 = arith.constant 0 : index
    %c0_154 = arith.constant 0 : index
    %361 = vector.load %arg13[%c1_152, %c0_153, %c0_154] : memref<2x1x32xf32, #tpu.memory_space<vmem>>, vector<1x1x32xf32>
    %362 = vector.shape_cast %361 : vector<1x1x32xf32> to vector<1x32xf32>
    %363 = vector.broadcast %362 : vector<1x32xf32> to vector<16x32xf32>
    %364 = arith.addf %360, %363 : vector<16x32xf32>
    %365 = arith.addf %364, %337 : vector<16x32xf32>
    %c1_155 = arith.constant 1 : index
    %c0_156 = arith.constant 0 : index
    %c0_157 = arith.constant 0 : index
    %366 = vector.load %arg14[%c1_155, %c0_156, %c0_157] : memref<2x1x32xf32, #tpu.memory_space<vmem>>, vector<1x1x32xf32>
    %367 = vector.shape_cast %366 : vector<1x1x32xf32> to vector<1x32xf32>
    %c1_158 = arith.constant 1 : index
    %c0_159 = arith.constant 0 : index
    %c0_160 = arith.constant 0 : index
    %368 = vector.load %arg15[%c1_158, %c0_159, %c0_160] : memref<2x1x32xf32, #tpu.memory_space<vmem>>, vector<1x1x32xf32>
    %369 = vector.shape_cast %368 : vector<1x1x32xf32> to vector<1x32xf32>
    %cst_161 = arith.constant dense<0.000000e+00> : vector<16xf32>
    %370 = vector.multi_reduction <add>, %365, %cst_161 [1] : vector<16x32xf32> to vector<16xf32>
    %371 = vector.shape_cast %370 : vector<16xf32> to vector<16x1xf32>
    %cst_162 = arith.constant 3.200000e+01 : f32
    %372 = vector.broadcast %cst_162 : f32 to vector<16x1xf32>
    %373 = arith.divf %371, %372 : vector<16x1xf32>
    %374 = vector.broadcast %373 : vector<16x1xf32> to vector<16x32xf32>
    %375 = arith.subf %365, %374 : vector<16x32xf32>
    %376 = arith.mulf %375, %375 : vector<16x32xf32>
    %cst_163 = arith.constant dense<0.000000e+00> : vector<16xf32>
    %377 = vector.multi_reduction <add>, %376, %cst_163 [1] : vector<16x32xf32> to vector<16xf32>
    %378 = vector.shape_cast %377 : vector<16xf32> to vector<16x1xf32>
    %cst_164 = arith.constant 3.200000e+01 : f32
    %379 = vector.broadcast %cst_164 : f32 to vector<16x1xf32>
    %380 = arith.divf %378, %379 : vector<16x1xf32>
    %381 = vector.broadcast %373 : vector<16x1xf32> to vector<16x32xf32>
    %382 = arith.subf %365, %381 : vector<16x32xf32>
    %cst_165 = arith.constant 9.99999996E-13 : f32
    %383 = vector.broadcast %cst_165 : f32 to vector<16x1xf32>
    %384 = arith.addf %380, %383 : vector<16x1xf32>
    %385 = math.rsqrt %384 : vector<16x1xf32>
    %386 = vector.broadcast %385 : vector<16x1xf32> to vector<16x32xf32>
    %387 = arith.mulf %382, %386 : vector<16x32xf32>
    %388 = vector.broadcast %367 : vector<1x32xf32> to vector<16x32xf32>
    %389 = arith.mulf %387, %388 : vector<16x32xf32>
    %390 = vector.broadcast %369 : vector<1x32xf32> to vector<16x32xf32>
    %391 = arith.addf %389, %390 : vector<16x32xf32>
    %392 = vector.extract_strided_slice %391 {offsets = [0, 0], sizes = [1, 32], strides = [1, 1]} : vector<16x32xf32> to vector<1x32xf32>
    %393 = vector.extract_strided_slice %391 {offsets = [8, 0], sizes = [1, 32], strides = [1, 1]} : vector<16x32xf32> to vector<1x32xf32>
    %394 = tpu.concatenate %392, %393 in 0 : vector<1x32xf32>, vector<1x32xf32> -> vector<2x32xf32>
    %c0_166 = arith.constant 0 : index
    %c0_167 = arith.constant 0 : index
    %395 = vector.load %arg16[%c0_166, %c0_167] : memref<32x32xf32, #tpu.memory_space<vmem>>, vector<32x32xf32>
    %cst_168 = arith.constant dense<0.000000e+00> : vector<2x32xf32>
    %396 = tpu.matmul %394, %395, %cst_168 {dimension_numbers = #tpu.dot_dimension_numbers<[1], [0], [0], [1], [0, 0, 1, 1], [], []>} : vector<2x32xf32>, vector<32x32xf32>, vector<2x32xf32> -> vector<2x32xf32>
    %c0_169 = arith.constant 0 : index
    %c0_170 = arith.constant 0 : index
    %397 = vector.load %arg17[%c0_169, %c0_170] : memref<1x32xf32, #tpu.memory_space<vmem>>, vector<1x32xf32>
    %398 = vector.broadcast %397 : vector<1x32xf32> to vector<2x32xf32>
    %399 = arith.addf %396, %398 : vector<2x32xf32>
    %400 = math.tanh %399 : vector<2x32xf32>
    %c0_171 = arith.constant 0 : index
    %c0_172 = arith.constant 0 : index
    %401 = vector.load %arg18[%c0_171, %c0_172] : memref<32x128xf32, #tpu.memory_space<vmem>>, vector<32x128xf32>
    %cst_173 = arith.constant dense<0.000000e+00> : vector<2x128xf32>
    %402 = tpu.matmul %400, %401, %cst_173 {dimension_numbers = #tpu.dot_dimension_numbers<[1], [0], [0], [1], [0, 0, 1, 1], [], []>} : vector<2x32xf32>, vector<32x128xf32>, vector<2x128xf32> -> vector<2x128xf32>
    %c0_174 = arith.constant 0 : index
    %c0_175 = arith.constant 0 : index
    %403 = vector.load %arg19[%c0_174, %c0_175] : memref<1x128xf32, #tpu.memory_space<vmem>>, vector<1x128xf32>
    %404 = vector.broadcast %403 : vector<1x128xf32> to vector<2x128xf32>
    %405 = arith.addf %402, %404 : vector<2x128xf32>
    %c0_176 = arith.constant 0 : index
    %c0_177 = arith.constant 0 : index
    %406 = vector.load %arg20[%c0_176, %c0_177] : memref<2x128xf32, #tpu.memory_space<vmem>>, vector<2x128xf32>
    tpu.vector_store %arg20[%c0_176, %c0_177], %405 {strides = array<i32>} : memref<2x128xf32, #tpu.memory_space<vmem>>, vector<2x128xf32>,
    return
  }
}

</mosaic_0001>

<bundles_post_ra>
// kernel: tpu_custom_call.1
= control target key start
LH: loop header
LB: loop body
LE: loop exit
PB: predicated region body
PF: predicated region fallthrough
CT: control target
= control target key end

     0   :  { %s2506_s0 = inlined_call_operand.hbm [shape: f32[16,32], index: 0, kind: input, shape index: {}]   ;;  %s2507_s1 = inlined_call_operand.hbm [shape: f32[2,8], index: 1, kind: input, shape index: {}]   ;;  %s2508_s2 = inlined_call_operand.hbm [shape: f32[1,32], index: 2, kind: input, shape index: {}]   ;;  %s2509_s3 = inlined_call_operand.hbm [shape: f32[1,32], index: 3, kind: input, shape index: {}]   ;;  %s2510_s4 = inlined_call_operand.vmem [shape: f32[2,32,96], index: 4, kind: input, shape index: {}]   ;;  %s2511_s5 = inlined_call_operand.vmem [shape: f32[2,1,96], index: 5, kind: input, shape index: {}]   ;;  %s2512_s6 = inlined_call_operand.vmem [shape: f32[2,32,32], index: 6, kind: input, shape index: {}]   ;;  %s2513_s7 = inlined_call_operand.vmem [shape: f32[2,1,32], index: 7, kind: input, shape index: {}]   ;;  %s2514_s8 = inlined_call_operand.hbm [shape: f32[2,1,32], index: 8, kind: input, shape index: {}]   ;;  %s2515_s9 = inlined_call_operand.vmem [shape: f32[2,1,32], index: 9, kind: input, shape index: {}]   ;;  %s2516_s10 = inlined_call_operand.vmem [shape: f32[2,32,64], index: 10, kind: input, shape index: {}]   ;;  %s2517_s11 = inlined_call_operand.vmem [shape: f32[2,1,64], index: 11, kind: input, shape index: {}]   ;;  %s2518_s12 = inlined_call_operand.vmem [shape: f32[2,64,32], index: 12, kind: input, shape index: {}]   ;;  %s2519_s13 = inlined_call_operand.vmem [shape: f32[2,1,32], index: 13, kind: input, shape index: {}]   ;;  %s2520_s14 = inlined_call_operand.hbm [shape: f32[2,1,32], index: 14, kind: input, shape index: {}]   ;;  %s2521_s15 = inlined_call_operand.vmem [shape: f32[2,1,32], index: 15, kind: input, shape index: {}]   ;;  %s2522_s16 = inlined_call_operand.hbm [shape: f32[32,32], index: 16, kind: input, shape index: {}]   ;;  %s2523_s17 = inlined_call_operand.vmem [shape: f32[1,32], index: 17, kind: input, shape index: {}]   ;;  %s2524_s18 = inlined_call_operand.hbm [shape: f32[32,128], index: 18, kind: input, shape index: {}]   ;;  %s2525_s19 = inlined_call_operand.vmem [shape: f32[1,128], index: 19, kind: input, shape index: {}]   ;;  %s2526_s20 = inlined_call_operand.hbm [shape: f32[2,128], index: 20, kind: output, shape index: {}]  }
   0x1   :  { %2530 = sst [smem:[#allocation23_spill]] %s2506_s0 }
   0x2   :  { %2531 = sst [smem:[#allocation24_spill]] %s2507_s1 }
   0x3   :  { %2532 = sst [smem:[#allocation25_spill]] %s2508_s2 }
   0x4   :  { %2533 = sst [smem:[#allocation26_spill]] %s2509_s3 }
   0x5   :  { %2534 = sst [smem:[#allocation27_spill]] %s2510_s4 }
   0x6   :  { %2535 = sst [smem:[#allocation28_spill]] %s2525_s19 }
   0x7   :  { %2536 = sst [smem:[#allocation29_spill]] %s2526_s20 }
   0x8   :  { %25 = vsyncpa [#allocation3], 0 }
   0x9   :  { %26 = vsyncpa [#allocation6], 0 }
   0xa   :  { %27 = vsyncpa [#allocation9], 0 }
   0xb   :  { %28 = vsyncpa [#allocation12], 0 }
   0xc   :  { %29 = vsyncpa [#allocation15], 0  ;;  %s2537_s23 = sld [smem:[#allocation24_spill]] }
  0x12   :  { %s49_s24 = sshll.u32 %s2537_s23, 4  ;;  %s50_s24 = int_to_ptr.hbm [resolvable:$true] %s49_s24 }
  0x13   :  { %30 = vsyncpa [#allocation4], 0  ;;  %s1986_s2 = smov [#allocation5]   ;;  %s2538_s27 = sld [smem:[#allocation26_spill]] }
  0x14   :  { %s51_s25 = sshll.u32 %s1986_s2, 4  ;;  %s1987_s4 = smov [#allocation8]   ;;  %s52_s25 = int_to_ptr.vmem [resolvable:$true] %s51_s25 }
  0x15   :  { %54 = dma.hbm_to_vmem [thread:$0]  %s50_s24, 32, %s52_s25, [#allocation6]  }
  0x16   :  { %s73_s29 = sshll.u32 %s1987_s4, 4  ;;  %s112_s21 = sshll.u32 %s2520_s14, 4  ;;  %s74_s29 = int_to_ptr.vmem [resolvable:$true] %s73_s29  ;;  %s113_s21 = int_to_ptr.hbm [resolvable:$true] %s112_s21 }
  0x17   :  { %s1988_s1 = smov [#allocation11]   ;;  %s2539_s20 = sld [smem:[#allocation23_spill]] }
  0x18   :  { %s114_s22 = sshll.u32 %s1988_s1, 4  ;;  %s2528_s3 = smov 16   ;;  %s115_s22 = int_to_ptr.vmem [resolvable:$true] %s114_s22 }
  0x19   :  { %s71_s28 = sshll.u32 %s2538_s27, 4  ;;  %s1990_s26 = smov 1   ;;  %s72_s28 = int_to_ptr.hbm [resolvable:$true] %s71_s28 }
  0x1a   :  { %76 = dma.hbm_to_vmem [thread:$0]  %s72_s28, 16, %s74_s29, [#allocation9]  }
  0x1b   :  { %120 = dma.hbm_to_vmem [thread:$0]  %s113_s21, 32, %s115_s22, [#allocation12], %s2528_s3, %s2528_s3, %s1990_s26  }
  0x1c   :  { %s1991_s24 = smov [#allocation2]   ;;  %s1992_s27 = smov 128  }
  0x1d   :  { %s35_s19 = sshll.u32 %s2539_s20, 4  ;;  %s37_s25 = sshll.u32 %s1991_s24, 4  ;;  %s36_s19 = int_to_ptr.hbm [resolvable:$true] %s35_s19  ;;  %s38_s25 = int_to_ptr.vmem [resolvable:$true] %s37_s25 }
  0x1e   :  { %s1993_s28 = smov 8   ;;  %s2540_s29 = sld [smem:[#allocation25_spill]] }
  0x1f   :  { %43 = dma.hbm_to_vmem [thread:$0]  %s36_s19, 256, %s38_s25, [#allocation3], %s1992_s27, %s1992_s27, %s1993_s28  }
  0x20   :  { %s1994_s0 = smov [#allocation7]   ;;  %s89_s2 = sshll.u32 %s2514_s8, 4  ;;  %s90_s2 = int_to_ptr.hbm [resolvable:$true] %s89_s2 }
  0x21   :  { %s62_s1 = sshll.u32 %s1994_s0, 4  ;;  %s1995_s21 = smov [#allocation10]   ;;  %s63_s1 = int_to_ptr.vmem [resolvable:$true] %s62_s1 }
  0x22   :  { %s91_s22 = sshll.u32 %s1995_s21, 4  ;;  %s127_s19 = sshll.u32 %s2522_s16, 4  ;;  %s92_s22 = int_to_ptr.vmem [resolvable:$true] %s91_s22  ;;  %s128_s19 = int_to_ptr.hbm [resolvable:$true] %s127_s19 }
  0x23   :  { %s2541_s25 = smov 16   ;;  %s1996_s0 = smov [#allocation13]  }
  0x24   :  { %s60_s30 = sshll.u32 %s2540_s29, 4  ;;  %s142_s29 = sshll.u32 %s2524_s18, 4  ;;  %s61_s30 = int_to_ptr.hbm [resolvable:$true] %s60_s30  ;;  %s143_s29 = int_to_ptr.hbm [resolvable:$true] %s142_s29 }
  0x25   :  { %65 = dma.hbm_to_vmem [thread:$0]  %s61_s30, 16, %s63_s1, [#allocation6]  }
  0x26   :  { %97 = dma.hbm_to_vmem [thread:$0]  %s90_s2, 32, %s92_s22, [#allocation9], %s2541_s25, %s2541_s25, %s1990_s26  }
  0x27   :  { %s129_s20 = sshll.u32 %s1996_s0, 4  ;;  %s1997_s8 = smov [#allocation14]   ;;  %s130_s20 = int_to_ptr.vmem [resolvable:$true] %s129_s20 }
  0x28   :  { %135 = dma.hbm_to_vmem [thread:$0]  %s128_s19, 512, %s130_s20, [#allocation12], %s1992_s27, %s1992_s27, %s1993_s28  }
  0x29   :  { %s144_s30 = sshll.u32 %s1997_s8, 4  ;;  %s145_s30 = int_to_ptr.vmem [resolvable:$true] %s144_s30 }
  0x2a   :  { %150 = dma.hbm_to_vmem [thread:$0]  %s143_s29, 512, %s145_s30, [#allocation15], %s1992_s27, %s1992_s27, %s1993_s28  }
  0x2b   :  { %1974 = dma.done.wait [#allocation3], 256  }
  0x2c   :  { %1975 = vsyncadd [#allocation3], 4294967040 }
  0x2d   :  { %1976 = dma.done.wait [#allocation6], 48  }
  0x2e   :  { %1977 = vsyncadd [#allocation6], 4294967248 }
  0x2f   :  { %1978 = dma.done.wait [#allocation9], 48  }
  0x30   :  { %1979 = vsyncadd [#allocation9], 4294967248 }
  0x31   :  { %1980 = dma.done.wait [#allocation12], 544  }
  0x32   :  { %1981 = vsyncadd [#allocation12], 4294966752 }
  0x33   :  { %1982 = dma.done.wait [#allocation15], 512  }
  0x34   :  { %1983 = vsyncadd [#allocation15], 4294966784  ;;  %vm189_vm0 = vcmask 261120   ;;  %v185_v0 = vld [vmem:[#allocation2] sm:$0xff]  ;;  %v186_v1 = vld [vmem:[#allocation2 + $0x8] sm:$0xff]  ;;  %v1998_v4 = vmov 32.0  }
  0x35   :  { %v190_v2 = vsel %vm189_vm0, %v185_v0, 0.0  ;;  %v193_v3 = vsel %vm189_vm0, %v186_v1, 0.0  ;;  %1694 = vrcp.f32 %v1998_v4  ;;  %s2542_s3 = sld [smem:[#allocation27_spill]]  ;;  %v1674_v42 = vld [vmem:[#allocation7] ss:$0 sm:$0xff]  ;;  %s1999_s24 = smov 112  }
  0x36   :  { %191 = vadd.xlane.f32.xlu0 %v190_v2  ;;  %194 = vadd.xlane.f32.xlu1 %v193_v3  ;;  %v1675_v46 = vld [vmem:[#allocation8] ss:$0 sm:$0xff]  ;;  %v1676_v53 = vld [vmem:[%s2511_s5] ss:$0 sm:$0xff]  ;;  %s2000_s19 = smov 96   ;;  %s2001_s14 = smov 80  }
  0x37   :  { %vm292_vm8 = vcmask 130048   ;;  %v251_v60 = vld [vmem:[#allocation5] sm:$0x3]  ;;  %vm320_vm9 = vcmask 64512   ;;  %s2002_s4 = smov 64   ;;  %s2003_s29 = smov 48  }
  0x38   :  { %v2178_v61 = vperm.slane %v251_v60, 0  ;;  %s2543_s8 = sld [smem:[#allocation28_spill]]  ;;  %s2004_s30 = smov [#allocation16]  }
  0x39   :  { %s2544_s18 = sld [smem:[#allocation29_spill]] }
  0x3b   :  { %v1695_v5 = vpop.eup %1694  ;;  %v255_v21 = vld [vmem:[%s2542_s3 + $0x18] sm:$0xff]  ;;  %v254_v22 = vld [vmem:[%s2542_s3 + $0x10] sm:$0xff]  ;;  %v253_v23 = vld [vmem:[%s2542_s3 + $0x8] sm:$0xff] }
  0x3c   :  { %v197_v6 = vmul.f32 32.0, %v1695_v5  ;;  %vm201_vm1 = vweird.f32 %v1695_v5  ;;  %278 = vmatpush.msra.mxu0 %v255_v21  ;;  %v252_v24 = vld [vmem:[%s2542_s3] sm:$0xff] }
  0x3e   :  { %v198_v7 = vsub.f32 1.0, %v197_v6  ;;  %279 = vmatpush.msra.mxu0 %v254_v22 }
  0x40   :  { %v199_v8 = vmul.f32 %v1695_v5, %v198_v7  ;;  %280 = vmatpush.msra.mxu0 %v253_v23 }
  0x42   :  { %v200_v9 = vadd.f32 %v1695_v5, %v199_v8  ;;  %281 = vmatpush.msra.mxu0 %v252_v24 }
  0x44   :  { %v2140_v10 = vsel %vm201_vm1, %v1695_v5, %v200_v9 }
  0xa9   :  { %v192_v11 = vpop.xlane.xlu0 %191  ;;  %v195_v12 = vpop.xlane.xlu1 %194 }
  0xaa   :  { %v203_v13 = vmul.f32 %v2140_v10, %v192_v11  ;;  %v204_v14 = vmul.f32 %v2140_v10, %v195_v12 }
  0xac   :  { %v205_v15 = vsub.f32 %v185_v0, %v203_v13  ;;  %v206_v16 = vsub.f32 %v186_v1, %v204_v14 }
  0xae   :  { %v207_v17 = vmul.f32 %v205_v15, %v205_v15  ;;  %v208_v18 = vmul.f32 %v206_v16, %v206_v16 }
  0xb0   :  { %v209_v19 = vsel %vm189_vm0, %v207_v17, 0.0  ;;  %v212_v20 = vsel %vm189_vm0, %v208_v18, 0.0 }
  0xb1   :  { %210 = vadd.xlane.f32.xlu0 %v209_v19  ;;  %213 = vadd.xlane.f32.xlu1 %v212_v20 }
 0x124   :  { %v211_v25 = vpop.xlane.xlu0 %210  ;;  %v214_v26 = vpop.xlane.xlu1 %213 }
 0x125   :  { %v215_v27 = vmul.f32 %v211_v25, %v2140_v10  ;;  %v216_v28 = vmul.f32 %v214_v26, %v2140_v10 }
 0x127   :  { %v217_v29 = vadd.f32 1e-12, %v215_v27  ;;  %v218_v30 = vadd.f32 1e-12, %v216_v28 }
 0x129   :  { %1696 = vrsqrt.f32 %v217_v29  ;;  %vm235_vm2 = vweird.f32 %v218_v30  ;;  %vm225_vm5 = vweird.f32 %v217_v29 }
 0x12a   :  { %1698 = vrsqrt.f32 %v218_v30 }
 0x12f   :  { %v1697_v31 = vpop.eup %1696 }
 0x130   :  { %v1699_v32 = vpop.eup %1698  ;;  %v220_v33 = vmul.f32 %v1697_v31, %v217_v29  ;;  %vm226_vm4 = vweird.f32 %v1697_v31 }
 0x131   :  { %v230_v34 = vmul.f32 %v1699_v32, %v218_v30  ;;  %vm236_vm3 = vweird.f32 %v1699_v32  ;;  %vm227_vm7 = vmor %vm225_vm5, %vm226_vm4 }
 0x132   :  { %v221_v35 = vmul.f32 %v1697_v31, %v220_v33  ;;  %vm237_vm6 = vmor %vm235_vm2, %vm236_vm3 }
 0x133   :  { %v231_v36 = vmul.f32 %v1699_v32, %v230_v34 }
 0x134   :  { %v222_v37 = vmul.f32 0.5, %v221_v35  ;;  %v2201_v35 = vperm.slane %v251_v60, 1 }
 0x135   :  { %v232_v38 = vmul.f32 0.5, %v231_v36 }
 0x136   :  { %v223_v39 = vsub.f32 1.5, %v222_v37 }
 0x137   :  { %v233_v40 = vsub.f32 1.5, %v232_v38 }
 0x138   :  { %v224_v41 = vmul.f32 %v1697_v31, %v223_v39 }
 0x139   :  { %v234_v43 = vmul.f32 %v1699_v32, %v233_v40 }
 0x13a   :  { %v228_v44 = vsel %vm227_vm7, %v1697_v31, %v224_v41 }
 0x13b   :  { %v239_v45 = vmul.f32 %v228_v44, %v205_v15  ;;  %v238_v47 = vsel %vm237_vm6, %v1699_v32, %v234_v43 }
 0x13c   :  { %v240_v49 = vmul.f32 %v238_v47, %v206_v16 }
 0x13d   :  { %v244_v48 = vmul.f32 %v1674_v42, %v239_v45 }
 0x13e   :  { %v245_v51 = vmul.f32 %v1674_v42, %v240_v49 }
 0x13f   :  { %v2160_v50 = vadd.f32 %v1675_v46, %v244_v48 }
 0x140   :  { %v2164_v52 = vadd.f32 %v1675_v46, %v245_v51 }
 0x141   :  { %1587 = vmatmul.msk.f32.vlgmr.msra.gmra.mxu0 %vm189_vm0, %v2160_v50 }
 0x149   :  { %1588 = vmatmul.msk.f32.gmra.mxu0 %vm189_vm0, %v2164_v52 }
 0x1be   :  { %v283_v54 = vpop.f32.mrf.mxu0 }
 0x1bf   :  { %v284_v55 = vadd.f32 %v1676_v53, %v283_v54 }
 0x1c1   :  { %371 = vrot.lane.b32.xlu0 %v284_v55, %s1999_s24  ;;  %290 = vrot.lane.b32.xlu2 %v284_v55, %s2000_s19 }
 0x1c6   :  { %v286_v59 = vpop.f32.mrf.mxu0 }
 0x1c7   :  { %v2182_v4 = vadd.f32 %v1676_v53, %v286_v59 }
 0x1c9   :  { %373 = vrot.lane.b32.xlu2 %v284_v55, %s2001_s14 }
 0x21b   :  { %v291_v56 = vpop.permute.xlu2 %290 }
 0x21c   :  { %1589 = vmatpush.xpose.msk.msrb.mxu0 %vm292_vm8, %v291_v56 }
 0x21f   :  { %1590 = vmatmul.msk.f32.vlgmr.msrb.gmra.mxu0 %vm292_vm8, %v284_v55 }
 0x223   :  { %v374_v57 = vpop.permute.xlu2 %373 }
 0x224   :  { %1592 = vmatpush.xpose.msk.msra.mxu3 %vm292_vm8, %v374_v57 }
 0x233   :  { %v372_v58 = vpop.permute.xlu0 %371 }
 0x234   :  { %1593 = vmatmul.msk.f32.vlgmr.msra.gmra.mxu3 %vm292_vm8, %v372_v58 }
 0x29c   :  { %v314_v62 = vpop.f32.mrf.mxu0 }
 0x29d   :  { %v317_v63 = vmul.f32 0.25, %v314_v62 }
 0x29f   :  { %v319_v0 = vadd.f32 %v2178_v61, %v317_v63 }
 0x2a1   :  { %v321_v1 = vsel %vm320_vm9, %v319_v0, -inf }
 0x2a2   :  { %322 = vmax.xlane.f32.xlu1 %v321_v1 }
 0x2b7   :  { %v396_v2 = vpop.f32.mrf.mxu3 }
 0x2b8   :  { %v399_v3 = vmul.f32 0.25, %v396_v2 }
 0x2ba   :  { %v400_v5 = vadd.f32 %v399_v3, %v2178_v61  ;;  %v624_v3 = vld [vmem:[%s2512_s6 + $0x18] sm:$0xff] }
 0x2bb   :  { %457 = vrot.lane.b32.xlu1 %v2182_v4, %s2000_s19 }
 0x2bc   :  { %v401_v6 = vsel %vm320_vm9, %v400_v5, -inf }
 0x2bd   :  { %402 = vmax.xlane.f32.xlu2 %v401_v6  ;;  %v621_v6 = vld [vmem:[%s2512_s6] sm:$0xff] }
 0x2d5   :  { %345 = vrot.lane.b32.xlu2 %v284_v55, %s2002_s4 }
 0x2dd   :  { %538 = vrot.lane.b32.xlu2 %v2182_v4, %s2001_s14 }
 0x2e5   :  { %536 = vrot.lane.b32.xlu2 %v2182_v4, %s1999_s24 }
 0x315   :  { %v323_v7 = vpop.xlane.xlu1 %322 }
 0x316   :  { %v324_v8 = vsub.f32 %v319_v0, %v323_v7 }
 0x318   :  { %v325_v9 = vmul.f32 1.442695, %v324_v8 }
 0x31a   :  { %1700 = vpow2.f32 %v325_v9 }
 0x320   :  { %v1701_v11 = vpop.eup %1700 }
 0x321   :  { %v327_v12 = vsel %vm320_vm9, %v1701_v11, 0.0 }
 0x322   :  { %328 = vadd.xlane.f32.xlu0 %v327_v12 }
 0x32d   :  { %v458_v13 = vpop.permute.xlu1 %457 }
 0x32e   :  { %1595 = vmatpush.xpose.msk.msra.mxu1 %vm292_vm8, %v458_v13 }
 0x330   :  { %v403_v14 = vpop.xlane.xlu2 %402 }
 0x331   :  { %v404_v15 = vsub.f32 %v400_v5, %v403_v14  ;;  %1596 = vmatmul.msk.f32.vlgmr.msra.gmra.mxu1 %vm292_vm8, %v2182_v4  ;;  %v623_v5 = vld [vmem:[%s2512_s6 + $0x10] sm:$0xff] }
 0x333   :  { %v405_v16 = vmul.f32 1.442695, %v404_v15 }
 0x335   :  { %1702 = vpow2.f32 %v405_v16 }
 0x336   :  { %425 = vrot.lane.b32.xlu0 %v284_v55, %s2003_s29 }
 0x338   :  { %v346_v17 = vpop.permute.xlu2 %345 }
 0x339   :  { %366 = vmatpush.msra.mxu2 %v346_v17 }
 0x33b   :  { %v1703_v18 = vpop.eup %1702 }
 0x33c   :  { %v407_v19 = vsel %vm320_vm9, %v1703_v18, 0.0 }
 0x33d   :  { %408 = vadd.xlane.f32.xlu1 %v407_v19 }
 0x340   :  { %v539_v33 = vpop.permute.xlu2 %538 }
 0x348   :  { %v537_v53 = vpop.permute.xlu2 %536 }
 0x395   :  { %v329_v20 = vpop.xlane.xlu0 %328 }
 0x396   :  { %1704 = vrcp.f32 %v329_v20  ;;  %v341_v24 = vand.u32 2147483648, %v329_v20  ;;  %v339_v26 = vand.u32 2147483647, %v329_v20  ;;  %vm335_vm11 = vweird.f32 %v329_v20 }
 0x398   :  { %v342_v28 = vor.u32 1.1754944e-38, %v341_v24  ;;  %vm340_vm13 = vcmp.eq.f32.partialorder %v339_v26, 8.507059e+37 }
 0x39c   :  { %v1705_v21 = vpop.eup %1704 }
 0x39d   :  { %v331_v22 = vmul.f32 %v1705_v21, %v329_v20  ;;  %vm336_vm10 = vweird.f32 %v1705_v21 }
 0x39e   :  { %vm337_vm12 = vmor %vm335_vm11, %vm336_vm10 }
 0x39f   :  { %v332_v23 = vsub.f32 1.0, %v331_v22 }
 0x3a1   :  { %v333_v25 = vmul.f32 %v1705_v21, %v332_v23 }
 0x3a3   :  { %v334_v27 = vadd.f32 %v1705_v21, %v333_v25 }
 0x3a5   :  { %v338_v29 = vsel %vm337_vm12, %v1705_v21, %v334_v27 }
 0x3a6   :  { %v343_v30 = vsel %vm340_vm13, %v342_v28, %v338_v29  ;;  %v2234_v29 = vld [vmem:[%s2513_s7] ss:$0 sm:$0xff] }
 0x3a7   :  { %v344_v31 = vmul.f32 %v1701_v11, %v343_v30 }
 0x3a8   :  { %v426_v32 = vpop.permute.xlu0 %425 }
 0x3a9   :  { %1591 = vmatmul.msk.f32.vlgmr.msra.gmra.mxu2 %vm320_vm9, %v344_v31 }
 0x3aa   :  { %446 = vmatpush.msrb.mxu2 %v426_v32 }
 0x3ac   :  { %1598 = vmatpush.xpose.msk.msra.mxu2 %vm292_vm8, %v539_v33 }
 0x3ae   :  { %v480_v34 = vpop.f32.mrf.mxu1 }
 0x3af   :  { %v483_v36 = vmul.f32 0.25, %v480_v34 }
 0x3b0   :  { %v409_v37 = vpop.xlane.xlu1 %408 }
 0x3b1   :  { %1706 = vrcp.f32 %v409_v37  ;;  %v485_v38 = vadd.f32 %v2201_v35, %v483_v36  ;;  %v421_v43 = vand.u32 2147483648, %v409_v37  ;;  %v419_v45 = vand.u32 2147483647, %v409_v37 }
 0x3b2   :  { %vm415_vm15 = vweird.f32 %v409_v37 }
 0x3b3   :  { %v486_v39 = vsel %vm320_vm9, %v485_v38, -inf  ;;  %v422_v47 = vor.u32 1.1754944e-38, %v421_v43  ;;  %vm420_vm2 = vcmp.eq.f32.partialorder %v419_v45, 8.507059e+37 }
 0x3b4   :  { %487 = vmax.xlane.f32.xlu1 %v486_v39 }
 0x3b7   :  { %v1707_v40 = vpop.eup %1706 }
 0x3b8   :  { %v411_v41 = vmul.f32 %v1707_v40, %v409_v37  ;;  %vm416_vm14 = vweird.f32 %v1707_v40 }
 0x3b9   :  { %vm417_vm1 = vmor %vm415_vm15, %vm416_vm14 }
 0x3ba   :  { %v412_v42 = vsub.f32 1.0, %v411_v41 }
 0x3bc   :  { %v413_v44 = vmul.f32 %v1707_v40, %v412_v42 }
 0x3be   :  { %v414_v46 = vadd.f32 %v1707_v40, %v413_v44 }
 0x3c0   :  { %v418_v48 = vsel %vm417_vm1, %v1707_v40, %v414_v46  ;;  %vm783_vm1 = vcmask 523264  }
 0x3c1   :  { %v423_v49 = vsel %vm420_vm2, %v422_v47, %v418_v48 }
 0x3c2   :  { %v424_v51 = vmul.f32 %v1703_v18, %v423_v49 }
 0x3c4   :  { %1594 = vmatmul.msk.f32.vlgmr.msrb.gmra.mxu2 %vm320_vm9, %v424_v51 }
 0x3cc   :  { %1599 = vmatmul.msk.f32.vlgmr.msra.gmra.mxu2 %vm292_vm8, %v537_v53 }
 0x3cd   :  { %510 = vrot.lane.b32.xlu1 %v2182_v4, %s2002_s4 }
 0x427   :  { %v488_v54 = vpop.xlane.xlu1 %487 }
 0x428   :  { %v489_v55 = vsub.f32 %v485_v38, %v488_v54  ;;  %v719_v54 = vld [vmem:[%s2516_s10 + $0x18] sm:$0xff] }
 0x429   :  { %742 = vmatpush.msra.mxu0 %v719_v54 }
 0x42a   :  { %v490_v56 = vmul.f32 1.442695, %v489_v55  ;;  %v718_v55 = vld [vmem:[%s2516_s10 + $0x10] sm:$0xff] }
 0x42b   :  { %743 = vmatpush.msra.mxu0 %v718_v55 }
 0x42c   :  { %1708 = vpow2.f32 %v490_v56  ;;  %v368_v59 = vpop.f32.mrf.mxu2  ;;  %v717_v56 = vld [vmem:[%s2516_s10 + $0x8] sm:$0xff] }
 0x42d   :  { %744 = vmatpush.msra.mxu0 %v717_v56 }
 0x432   :  { %v1709_v57 = vpop.eup %1708 }
 0x433   :  { %v492_v58 = vsel %vm320_vm9, %v1709_v57, 0.0 }
 0x434   :  { %493 = vadd.xlane.f32.xlu2 %v492_v58 }
 0x43f   :  { %v511_v60 = vpop.permute.xlu1 %510 }
 0x440   :  { %531 = vmatpush.msrb.mxu3 %v511_v60 }
 0x442   :  { %647 = vmatpush.msra.mxu3 %v624_v3 }
 0x444   :  { %648 = vmatpush.msra.mxu3 %v623_v5 }
 0x447   :  { %v448_v62 = vpop.f32.mrf.mxu2 }
 0x448   :  { %452 = vrot.lane.b32.xlu1 %v448_v62, %s2541_s25 }
 0x44c   :  { %590 = vrot.lane.b32.xlu2 %v2182_v4, %s2003_s29  ;;  %v622_v4 = vld [vmem:[%s2512_s6 + $0x8] sm:$0xff] }
 0x44d   :  { %649 = vmatpush.msra.mxu3 %v622_v4 }
 0x44f   :  { %v561_v63 = vpop.f32.mrf.mxu2  ;;  %650 = vmatpush.msra.mxu3 %v621_v6  ;;  %v2258_v6 = vld [vmem:[#allocation10] ss:$0 sm:$0xff] }
 0x450   :  { %v564_v0 = vmul.f32 0.25, %v561_v63 }
 0x452   :  { %v565_v1 = vadd.f32 %v564_v0, %v2201_v35 }
 0x454   :  { %v566_v2 = vsel %vm320_vm9, %v565_v1, -inf }
 0x455   :  { %567 = vmax.xlane.f32.xlu0 %v566_v2 }
 0x4a7   :  { %v494_v7 = vpop.xlane.xlu2 %493 }
 0x4a8   :  { %1710 = vrcp.f32 %v494_v7  ;;  %v506_v13 = vand.u32 2147483648, %v494_v7  ;;  %v504_v15 = vand.u32 2147483647, %v494_v7  ;;  %vm500_vm4 = vweird.f32 %v494_v7 }
 0x4aa   :  { %v507_v17 = vor.u32 1.1754944e-38, %v506_v13  ;;  %vm505_vm6 = vcmp.eq.f32.partialorder %v504_v15, 8.507059e+37  ;;  %v778_v13 = vld [vmem:[%s2518_s12 + $0x38] sm:$0xff]  ;;  %v776_v15 = vld [vmem:[%s2518_s12 + $0x28] sm:$0xff] }
 0x4ab   :  { %798 = vmatpush.msrb.mxu2 %v778_v13 }
 0x4ae   :  { %v1711_v8 = vpop.eup %1710 }
 0x4af   :  { %v496_v9 = vmul.f32 %v1711_v8, %v494_v7  ;;  %v591_v11 = vpop.permute.xlu2 %590  ;;  %vm501_vm3 = vweird.f32 %v1711_v8 }
 0x4b0   :  { %611 = vmatpush.msrb.mxu1 %v591_v11  ;;  %vm502_vm5 = vmor %vm500_vm4, %vm501_vm3 }
 0x4b1   :  { %v497_v12 = vsub.f32 1.0, %v496_v9  ;;  %v2263_v9 = vld [vmem:[%s2515_s9] ss:$0 sm:$0xff] }
 0x4b3   :  { %v498_v14 = vmul.f32 %v1711_v8, %v497_v12 }
 0x4b5   :  { %v499_v16 = vadd.f32 %v1711_v8, %v498_v14  ;;  %v777_v14 = vld [vmem:[%s2518_s12 + $0x30] sm:$0xff] }
 0x4b6   :  { %799 = vmatpush.msrb.mxu2 %v777_v14 }
 0x4b7   :  { %v503_v18 = vsel %vm502_vm5, %v1711_v8, %v499_v16  ;;  %v775_v16 = vld [vmem:[%s2518_s12 + $0x20] sm:$0xff] }
 0x4b8   :  { %v508_v19 = vsel %vm505_vm6, %v507_v17, %v503_v18  ;;  %800 = vmatpush.msrb.mxu2 %v776_v15  ;;  %v774_v17 = vld [vmem:[%s2518_s12 + $0x18] sm:$0xff]  ;;  %v773_v18 = vld [vmem:[%s2518_s12 + $0x10] sm:$0xff] }
 0x4b9   :  { %v509_v20 = vmul.f32 %v1709_v57, %v508_v19  ;;  %v716_v57 = vld [vmem:[%s2516_s10] sm:$0xff]  ;;  %v772_v19 = vld [vmem:[%s2518_s12 + $0x8] sm:$0xff] }
 0x4ba   :  { %v453_v21 = vpop.permute.xlu1 %452  ;;  %745 = vmatpush.msra.mxu0 %v716_v57  ;;  %801 = vmatpush.msrb.mxu2 %v775_v16 }
 0x4bb   :  { %1597 = vmatmul.msk.f32.vlgmr.msrb.gmra.mxu3 %vm320_vm9, %v509_v20  ;;  %v455_v22 = vsel %vm292_vm8, %v368_v59, %v453_v21  ;;  %v771_v20 = vld [vmem:[%s2518_s12] sm:$0xff] }
 0x4bc   :  { %802 = vmatpush.msrb.mxu2 %v774_v17 }
 0x4be   :  { %803 = vmatpush.msrb.mxu2 %v773_v18 }
 0x4c0   :  { %804 = vmatpush.msrb.mxu2 %v772_v19 }
 0x4c2   :  { %805 = vmatpush.msrb.mxu2 %v771_v20 }
 0x4c3   :  { %1601 = vmatmul.msk.f32.vlgmr.msra.gmra.mxu3 %vm189_vm0, %v455_v22 }
 0x4c8   :  { %v568_v23 = vpop.xlane.xlu0 %567 }
 0x4c9   :  { %v569_v24 = vsub.f32 %v565_v1, %v568_v23  ;;  %v1680_v23 = vld [vmem:[%s2517_s11] ss:$0 sm:$0xff] }
 0x4cb   :  { %v570_v25 = vmul.f32 1.442695, %v569_v24 }
 0x4cd   :  { %1712 = vpow2.f32 %v570_v25 }
 0x4d3   :  { %v1713_v26 = vpop.eup %1712 }
 0x4d4   :  { %v572_v27 = vsel %vm320_vm9, %v1713_v26, 0.0 }
 0x4d5   :  { %573 = vadd.xlane.f32.xlu1 %v572_v27 }
 0x53e   :  { %v533_v28 = vpop.f32.mrf.mxu3 }
 0x546   :  { %v652_v30 = vpop.f32.mrf.mxu3 }
 0x547   :  { %v653_v31 = vadd.f32 %v2234_v29, %v652_v30 }
 0x548   :  { %v574_v32 = vpop.xlane.xlu1 %573 }
 0x549   :  { %1714 = vrcp.f32 %v574_v32  ;;  %v658_v33 = vadd.f32 %v653_v31, %v2160_v50  ;;  %v586_v39 = vand.u32 2147483648, %v574_v32  ;;  %v584_v41 = vand.u32 2147483647, %v574_v32 }
 0x54a   :  { %vm580_vm10 = vweird.f32 %v574_v32 }
 0x54b   :  { %v662_v34 = vsel %vm189_vm0, %v658_v33, 0.0  ;;  %v587_v43 = vor.u32 1.1754944e-38, %v586_v39  ;;  %vm585_vm12 = vcmp.eq.f32.partialorder %v584_v41, 8.507059e+37 }
 0x54c   :  { %663 = vadd.xlane.f32.xlu0 %v662_v34 }
 0x54f   :  { %v1715_v36 = vpop.eup %1714 }
 0x550   :  { %v576_v37 = vmul.f32 %v1715_v36, %v574_v32  ;;  %vm581_vm7 = vweird.f32 %v1715_v36 }
 0x551   :  { %vm582_vm11 = vmor %vm580_vm10, %vm581_vm7 }
 0x552   :  { %v577_v38 = vsub.f32 1.0, %v576_v37 }
 0x554   :  { %v578_v40 = vmul.f32 %v1715_v36, %v577_v38 }
 0x556   :  { %v579_v42 = vadd.f32 %v1715_v36, %v578_v40 }
 0x558   :  { %v583_v44 = vsel %vm582_vm11, %v1715_v36, %v579_v42  ;;  %v2304_v42 = vld [vmem:[%s2519_s13] ss:$0 sm:$0xff] }
 0x559   :  { %v588_v45 = vsel %vm585_vm12, %v587_v43, %v583_v44 }
 0x55a   :  { %v589_v46 = vmul.f32 %v1713_v26, %v588_v45 }
 0x55c   :  { %1600 = vmatmul.msk.f32.vlgmr.msrb.gmra.mxu1 %vm320_vm9, %v589_v46 }
 0x5bf   :  { %v664_v50 = vpop.xlane.xlu0 %663 }
 0x5c0   :  { %v668_v47 = vmul.f32 %v664_v50, %v2140_v10 }
 0x5c2   :  { %v670_v48 = vsub.f32 %v658_v33, %v668_v47 }
 0x5c4   :  { %v672_v49 = vmul.f32 %v670_v48, %v670_v48 }
 0x5c6   :  { %v674_v51 = vsel %vm189_vm0, %v672_v49, 0.0 }
 0x5c7   :  { %675 = vadd.xlane.f32.xlu2 %v674_v51 }
 0x5d9   :  { %v613_v53 = vpop.f32.mrf.mxu1 }
 0x5da   :  { %617 = vrot.lane.b32.xlu0 %v613_v53, %s2541_s25 }
 0x63a   :  { %v676_v58 = vpop.xlane.xlu2 %675 }
 0x63b   :  { %v680_v59 = vmul.f32 %v676_v58, %v2140_v10 }
 0x63d   :  { %v682_v60 = vadd.f32 1e-12, %v680_v59 }
 0x63f   :  { %1716 = vrsqrt.f32 %v682_v60  ;;  %vm690_vm14 = vweird.f32 %v682_v60 }
 0x645   :  { %v1717_v62 = vpop.eup %1716 }
 0x646   :  { %v685_v63 = vmul.f32 %v1717_v62, %v682_v60  ;;  %vm691_vm13 = vweird.f32 %v1717_v62 }
 0x647   :  { %vm692_vm15 = vmor %vm690_vm14, %vm691_vm13 }
 0x648   :  { %v686_v0 = vmul.f32 %v1717_v62, %v685_v63 }
 0x64a   :  { %v687_v1 = vmul.f32 0.5, %v686_v0 }
 0x64c   :  { %v618_v2 = vpop.permute.xlu0 %617  ;;  %v688_v3 = vsub.f32 1.5, %v687_v1 }
 0x64d   :  { %v620_v5 = vsel %vm292_vm8, %v533_v28, %v618_v2 }
 0x64e   :  { %1602 = vmatmul.msk.f32.gmra.mxu3 %vm189_vm0, %v620_v5  ;;  %v689_v4 = vmul.f32 %v1717_v62, %v688_v3  ;;  %v1610_v3 = vld [vmem:[%s2542_s3 + $0x38] sm:$0xff]  ;;  %v1609_v5 = vld [vmem:[%s2542_s3 + $0x30] sm:$0xff] }
 0x64f   :  { %899 = vmatpush.msra.mxu1 %v1610_v3 }
 0x650   :  { %v693_v7 = vsel %vm692_vm15, %v1717_v62, %v689_v4 }
 0x651   :  { %v704_v8 = vmul.f32 %v693_v7, %v670_v48  ;;  %900 = vmatpush.msra.mxu1 %v1609_v5  ;;  %v1607_v7 = vld [vmem:[%s2542_s3 + $0x20] sm:$0xff] }
 0x653   :  { %v709_v11 = vmul.f32 %v2258_v6, %v704_v8 }
 0x655   :  { %v714_v12 = vadd.f32 %v2263_v9, %v709_v11 }
 0x657   :  { %1603 = vmatmul.msk.f32.vlgmr.msra.gmra.mxu0 %vm189_vm0, %v714_v12 }
 0x6d1   :  { %v655_v21 = vpop.f32.mrf.mxu3 }
 0x6d2   :  { %v656_v22 = vadd.f32 %v2234_v29, %v655_v21 }
 0x6d4   :  { %v659_v24 = vadd.f32 %v656_v22, %v2164_v52  ;;  %v747_v25 = vpop.f32.mrf.mxu0 }
 0x6d5   :  { %v748_v26 = vadd.f32 %v1680_v23, %v747_v25 }
 0x6d6   :  { %v665_v27 = vsel %vm189_vm0, %v659_v24, 0.0 }
 0x6d7   :  { %666 = vadd.xlane.f32.xlu0 %v665_v27  ;;  %v753_v28 = vmul.f32 %v748_v26, %v748_v26 }
 0x6d9   :  { %v755_v30 = vmul.f32 %v753_v28, %v748_v26  ;;  %v1682_v28 = vld [vmem:[#allocation11] ss:$0 sm:$0xff] }
 0x6db   :  { %v757_v31 = vmul.f32 0.044715, %v755_v30 }
 0x6dd   :  { %v759_v32 = vadd.f32 %v757_v31, %v748_v26 }
 0x6df   :  { %v761_v33 = vmul.f32 0.7978846, %v759_v32  ;;  %v1683_v32 = vld [vmem:[%s2521_s15] ss:$0 sm:$0xff] }
 0x6e1   :  { %1718 = vtanh.f32 %v761_v33 }
 0x6e7   :  { %v1719_v34 = vpop.eup %1718 }
 0x6e8   :  { %v765_v36 = vadd.f32 1.0, %v1719_v34 }
 0x6ea   :  { %v767_v29 = vmul.f32 0.5, %v765_v36 }
 0x6ec   :  { %v769_v37 = vmul.f32 %v767_v29, %v748_v26 }
 0x6ee   :  { %1605 = vmatmul.msk.f32.vlgmr.msrb.gmra.mxu2 %vm783_vm1, %v769_v37  ;;  %v1684_v37 = vld [vmem:[%s2511_s5 + $0x1] ss:$0 sm:$0xff] }
 0x74a   :  { %v667_v38 = vpop.xlane.xlu0 %666 }
 0x74b   :  { %v669_v52 = vmul.f32 %v667_v38, %v2140_v10 }
 0x74d   :  { %v671_v39 = vsub.f32 %v659_v24, %v669_v52 }
 0x74f   :  { %v673_v40 = vmul.f32 %v671_v39, %v671_v39 }
 0x751   :  { %v677_v41 = vsel %vm189_vm0, %v673_v40, 0.0 }
 0x752   :  { %678 = vadd.xlane.f32.xlu1 %v677_v41 }
 0x771   :  { %v807_v43 = vpop.f32.mrf.mxu2 }
 0x772   :  { %v808_v44 = vadd.f32 %v2304_v42, %v807_v43 }
 0x774   :  { %v813_v45 = vadd.f32 %v808_v44, %v714_v12 }
 0x776   :  { %v817_v46 = vsel %vm189_vm0, %v813_v45, 0.0 }
 0x777   :  { %818 = vadd.xlane.f32.xlu1 %v817_v46 }
 0x7c5   :  { %v679_v50 = vpop.xlane.xlu1 %678 }
 0x7c6   :  { %v681_v47 = vmul.f32 %v679_v50, %v2140_v10 }
 0x7c8   :  { %v683_v48 = vadd.f32 1e-12, %v681_v47 }
 0x7ca   :  { %1720 = vrsqrt.f32 %v683_v48  ;;  %vm700_vm3 = vweird.f32 %v683_v48 }
 0x7d0   :  { %v1721_v49 = vpop.eup %1720 }
 0x7d1   :  { %v695_v51 = vmul.f32 %v1721_v49, %v683_v48  ;;  %vm701_vm2 = vweird.f32 %v1721_v49 }
 0x7d2   :  { %vm702_vm4 = vmor %vm700_vm3, %vm701_vm2 }
 0x7d3   :  { %v696_v53 = vmul.f32 %v1721_v49, %v695_v51 }
 0x7d5   :  { %v697_v54 = vmul.f32 0.5, %v696_v53 }
 0x7d7   :  { %v698_v55 = vsub.f32 1.5, %v697_v54 }
 0x7d9   :  { %v699_v56 = vmul.f32 %v1721_v49, %v698_v55 }
 0x7db   :  { %v703_v57 = vsel %vm702_vm4, %v1721_v49, %v699_v56 }
 0x7dc   :  { %v705_v58 = vmul.f32 %v703_v57, %v671_v39 }
 0x7de   :  { %v710_v59 = vmul.f32 %v2258_v6, %v705_v58  ;;  %v1608_v6 = vld [vmem:[%s2542_s3 + $0x28] sm:$0xff]  ;;  %s1573_s3 = sshll.u32 %s2544_s18, 4  ;;  %s1574_s3 = int_to_ptr.hbm [resolvable:$true] %s1573_s3 }
 0x7df   :  { %901 = vmatpush.msra.mxu1 %v1608_v6 }
 0x7e0   :  { %v715_v60 = vadd.f32 %v2263_v9, %v710_v59 }
 0x7e1   :  { %902 = vmatpush.msra.mxu1 %v1607_v7 }
 0x7e2   :  { %1604 = vmatmul.msk.f32.gmra.mxu0 %vm189_vm0, %v715_v60 }
 0x7ea   :  { %v819_v62 = vpop.xlane.xlu1 %818 }
 0x7eb   :  { %v823_v63 = vmul.f32 %v819_v62, %v2140_v10 }
 0x7ed   :  { %v825_v0 = vsub.f32 %v813_v45, %v823_v63 }
 0x7ef   :  { %v827_v1 = vmul.f32 %v825_v0, %v825_v0 }
 0x7f1   :  { %v829_v2 = vsel %vm189_vm0, %v827_v1, 0.0 }
 0x7f2   :  { %830 = vadd.xlane.f32.xlu1 %v829_v2 }
 0x85f   :  { %v750_v4 = vpop.f32.mrf.mxu0 }
 0x860   :  { %v751_v8 = vadd.f32 %v1680_v23, %v750_v4 }
 0x862   :  { %v754_v9 = vmul.f32 %v751_v8, %v751_v8 }
 0x864   :  { %v756_v11 = vmul.f32 %v754_v9, %v751_v8 }
 0x865   :  { %v831_v13 = vpop.xlane.xlu1 %830 }
 0x866   :  { %v758_v12 = vmul.f32 0.044715, %v756_v11  ;;  %v835_v14 = vmul.f32 %v831_v13, %v2140_v10 }
 0x868   :  { %v760_v15 = vadd.f32 %v758_v12, %v751_v8  ;;  %v837_v16 = vadd.f32 1e-12, %v835_v14 }
 0x86a   :  { %v762_v17 = vmul.f32 0.7978846, %v760_v15  ;;  %1722 = vrsqrt.f32 %v837_v16  ;;  %vm845_vm6 = vweird.f32 %v837_v16 }
 0x86c   :  { %1724 = vtanh.f32 %v762_v17 }
 0x870   :  { %v1723_v18 = vpop.eup %1722 }
 0x871   :  { %v840_v20 = vmul.f32 %v1723_v18, %v837_v16  ;;  %vm846_vm5 = vweird.f32 %v1723_v18 }
 0x872   :  { %v1725_v19 = vpop.eup %1724  ;;  %vm847_vm7 = vmor %vm845_vm6, %vm846_vm5 }
 0x873   :  { %v766_v21 = vadd.f32 1.0, %v1725_v19  ;;  %v841_v22 = vmul.f32 %v1723_v18, %v840_v20 }
 0x875   :  { %v768_v24 = vmul.f32 0.5, %v766_v21  ;;  %v842_v23 = vmul.f32 0.5, %v841_v22 }
 0x877   :  { %v770_v25 = vmul.f32 %v768_v24, %v751_v8  ;;  %v843_v26 = vsub.f32 1.5, %v842_v23 }
 0x879   :  { %1606 = vmatmul.msk.f32.gmra.mxu2 %vm783_vm1, %v770_v25  ;;  %v844_v27 = vmul.f32 %v1723_v18, %v843_v26 }
 0x87b   :  { %v848_v30 = vsel %vm847_vm7, %v1723_v18, %v844_v27 }
 0x87c   :  { %v859_v31 = vmul.f32 %v848_v30, %v825_v0 }
 0x87e   :  { %v864_v33 = vmul.f32 %v1682_v28, %v859_v31 }
 0x880   :  { %v2331_v34 = vadd.f32 %v1683_v32, %v864_v33 }
 0x882   :  { %1612 = vmatmul.msk.f32.vlgmr.msra.gmra.mxu1 %vm189_vm0, %v2331_v34 }
 0x8fc   :  { %v810_v36 = vpop.f32.mrf.mxu2 }
 0x8fd   :  { %v811_v29 = vadd.f32 %v2304_v42, %v810_v36 }
 0x8ff   :  { %v814_v38 = vadd.f32 %v811_v29, %v715_v60  ;;  %v904_v52 = vpop.f32.mrf.mxu1 }
 0x900   :  { %v2339_v39 = vadd.f32 %v1684_v37, %v904_v52 }
 0x901   :  { %v820_v40 = vsel %vm189_vm0, %v814_v38, 0.0 }
 0x902   :  { %821 = vadd.xlane.f32.xlu1 %v820_v40  ;;  %911 = vrot.lane.b32.xlu2 %v2339_v39, %s2000_s19 }
 0x95c   :  { %v912_v41 = vpop.permute.xlu2 %911 }
 0x95d   :  { %1614 = vmatpush.xpose.msk.msrb.mxu3 %vm292_vm8, %v912_v41 }
 0x960   :  { %1615 = vmatmul.msk.f32.vlgmr.msrb.gmra.mxu3 %vm292_vm8, %v2339_v39 }
 0x975   :  { %v822_v42 = vpop.xlane.xlu1 %821 }
 0x976   :  { %v824_v43 = vmul.f32 %v822_v42, %v2140_v10 }
 0x978   :  { %v826_v44 = vsub.f32 %v814_v38, %v824_v43 }
 0x97a   :  { %v828_v45 = vmul.f32 %v826_v44, %v826_v44 }
 0x97c   :  { %v832_v46 = vsel %vm189_vm0, %v828_v45, 0.0 }
 0x97d   :  { %833 = vadd.xlane.f32.xlu1 %v832_v46 }
 0x996   :  { %991 = vrot.lane.b32.xlu1 %v2339_v39, %s2001_s14 }
 0x99e   :  { %963 = vrot.lane.b32.xlu1 %v2339_v39, %s2002_s4 }
 0x9e3   :  { %v934_v50 = vpop.f32.mrf.mxu3 }
 0x9e4   :  { %v937_v47 = vmul.f32 0.25, %v934_v50 }
 0x9e6   :  { %v938_v48 = vadd.f32 %v937_v47, %v2178_v61 }
 0x9e8   :  { %v939_v49 = vsel %vm320_vm9, %v938_v48, -inf }
 0x9e9   :  { %940 = vmax.xlane.f32.xlu0 %v939_v49 }
 0x9f0   :  { %v834_v51 = vpop.xlane.xlu1 %833 }
 0x9f1   :  { %v836_v53 = vmul.f32 %v834_v51, %v2140_v10 }
 0x9f3   :  { %v838_v54 = vadd.f32 1e-12, %v836_v53 }
 0x9f5   :  { %1726 = vrsqrt.f32 %v838_v54  ;;  %vm855_vm11 = vweird.f32 %v838_v54 }
 0x9fb   :  { %v1727_v55 = vpop.eup %1726 }
 0x9fc   :  { %v850_v56 = vmul.f32 %v1727_v55, %v838_v54  ;;  %vm856_vm10 = vweird.f32 %v1727_v55 }
 0x9fd   :  { %989 = vrot.lane.b32.xlu0 %v2339_v39, %s1999_s24  ;;  %vm857_vm12 = vmor %vm855_vm11, %vm856_vm10 }
 0x9fe   :  { %v851_v57 = vmul.f32 %v1727_v55, %v850_v56 }
 0xa00   :  { %v852_v58 = vmul.f32 0.5, %v851_v57 }
 0xa02   :  { %v853_v59 = vsub.f32 1.5, %v852_v58 }
 0xa04   :  { %v854_v60 = vmul.f32 %v1727_v55, %v853_v59 }
 0xa06   :  { %v858_v62 = vsel %vm857_vm12, %v1727_v55, %v854_v60 }
 0xa07   :  { %v860_v63 = vmul.f32 %v858_v62, %v826_v44 }
 0xa08   :  { %v992_v0 = vpop.permute.xlu1 %991 }
 0xa09   :  { %1617 = vmatpush.xpose.msk.msrb.mxu1 %vm292_vm8, %v992_v0  ;;  %v865_v1 = vmul.f32 %v1682_v28, %v860_v63 }
 0xa0b   :  { %v2359_v2 = vadd.f32 %v1683_v32, %v865_v1 }
 0xa0d   :  { %1613 = vmatmul.msk.f32.gmra.mxu1 %vm189_vm0, %v2359_v2 }
 0xa10   :  { %v964_v3 = vpop.permute.xlu1 %963 }
 0xa11   :  { %984 = vmatpush.msrb.mxu0 %v964_v3 }
 0xa5c   :  { %v941_v5 = vpop.xlane.xlu0 %940 }
 0xa5d   :  { %v942_v4 = vsub.f32 %v938_v48, %v941_v5 }
 0xa5f   :  { %v943_v6 = vmul.f32 1.442695, %v942_v4 }
 0xa61   :  { %1728 = vpow2.f32 %v943_v6 }
 0xa67   :  { %v1729_v7 = vpop.eup %1728 }
 0xa68   :  { %v945_v8 = vsel %vm320_vm9, %v1729_v7, 0.0 }
 0xa69   :  { %946 = vadd.xlane.f32.xlu0 %v945_v8 }
 0xa6f   :  { %v990_v9 = vpop.permute.xlu0 %989 }
 0xa70   :  { %1618 = vmatmul.msk.f32.vlgmr.msrb.gmra.mxu1 %vm292_vm8, %v990_v9  ;;  %v1629_v9 = vld [vmem:[%s2512_s6 + $0x38] sm:$0xff] }
 0xa8a   :  { %v907_v11 = vpop.f32.mrf.mxu1 }
 0xa8b   :  { %v2365_v12 = vadd.f32 %v1684_v37, %v907_v11  ;;  %v1628_v11 = vld [vmem:[%s2512_s6 + $0x30] sm:$0xff] }
 0xa8d   :  { %1155 = vrot.lane.b32.xlu2 %v2365_v12, %s2001_s14 }
 0xa95   :  { %1153 = vrot.lane.b32.xlu2 %v2365_v12, %s1999_s24 }
 0xa9d   :  { %1075 = vrot.lane.b32.xlu2 %v2365_v12, %s2000_s19 }
 0xadc   :  { %v947_v13 = vpop.xlane.xlu0 %946 }
 0xadd   :  { %1730 = vrcp.f32 %v947_v13  ;;  %v959_v18 = vand.u32 2147483648, %v947_v13  ;;  %v957_v20 = vand.u32 2147483647, %v947_v13  ;;  %vm953_vm14 = vweird.f32 %v947_v13 }
 0xadf   :  { %v960_v22 = vor.u32 1.1754944e-38, %v959_v18  ;;  %vm958_vm2 = vcmp.eq.f32.partialorder %v957_v20, 8.507059e+37 }
 0xae3   :  { %v1731_v14 = vpop.eup %1730 }
 0xae4   :  { %v949_v15 = vmul.f32 %v1731_v14, %v947_v13  ;;  %vm954_vm13 = vweird.f32 %v1731_v14 }
 0xae5   :  { %vm955_vm15 = vmor %vm953_vm14, %vm954_vm13 }
 0xae6   :  { %v950_v16 = vsub.f32 1.0, %v949_v15 }
 0xae7   :  { %v1156_v17 = vpop.permute.xlu2 %1155 }
 0xae8   :  { %1623 = vmatpush.xpose.msk.msra.mxu1 %vm292_vm8, %v1156_v17  ;;  %v951_v19 = vmul.f32 %v1731_v14, %v950_v16 }
 0xaea   :  { %v952_v21 = vadd.f32 %v1731_v14, %v951_v19 }
 0xaec   :  { %v956_v24 = vsel %vm955_vm15, %v1731_v14, %v952_v21  ;;  %v1627_v14 = vld [vmem:[%s2512_s6 + $0x28] sm:$0xff] }
 0xaed   :  { %v961_v23 = vsel %vm958_vm2, %v960_v22, %v956_v24  ;;  %v1014_v25 = vpop.f32.mrf.mxu1 }
 0xaee   :  { %v1017_v26 = vmul.f32 0.25, %v1014_v25  ;;  %v962_v28 = vmul.f32 %v1729_v7, %v961_v23 }
 0xaef   :  { %v1154_v27 = vpop.permute.xlu2 %1153 }
 0xaf0   :  { %1624 = vmatmul.msk.f32.vlgmr.msra.gmra.mxu1 %vm292_vm8, %v1154_v27  ;;  %1616 = vmatmul.msk.f32.vlgmr.msrb.gmra.mxu0 %vm320_vm9, %v962_v28  ;;  %v1018_v30 = vadd.f32 %v1017_v26, %v2178_v61 }
 0xaf2   :  { %v1019_v31 = vsel %vm320_vm9, %v1018_v30, -inf }
 0xaf3   :  { %1020 = vmax.xlane.f32.xlu1 %v1019_v31 }
 0xaf7   :  { %v1076_v32 = vpop.permute.xlu2 %1075 }
 0xaf8   :  { %1620 = vmatpush.xpose.msk.msra.mxu0 %vm292_vm8, %v1076_v32 }
 0xafb   :  { %1621 = vmatmul.msk.f32.vlgmr.msra.gmra.mxu0 %vm292_vm8, %v2365_v12 }
 0xafc   :  { %1266 = vmatpush.msrb.mxu0 %v1629_v9 }
 0xafe   :  { %1267 = vmatpush.msrb.mxu0 %v1628_v11 }
 0xb00   :  { %1268 = vmatpush.msrb.mxu0 %v1627_v14 }
 0xb66   :  { %v1021_v33 = vpop.xlane.xlu1 %1020 }
 0xb67   :  { %v1022_v36 = vsub.f32 %v1018_v30, %v1021_v33 }
 0xb69   :  { %v1023_v29 = vmul.f32 1.442695, %v1022_v36 }
 0xb6b   :  { %1732 = vpow2.f32 %v1023_v29 }
 0xb6d   :  { %v1178_v37 = vpop.f32.mrf.mxu1  ;;  %v2381_v52 = vpop.f32.mrf.mxu0 }
 0xb6e   :  { %v1181_v38 = vmul.f32 0.25, %v1178_v37 }
 0xb70   :  { %v1182_v40 = vadd.f32 %v1181_v38, %v2201_v35 }
 0xb71   :  { %v1733_v61 = vpop.eup %1732 }
 0xb72   :  { %v1183_v41 = vsel %vm320_vm9, %v1182_v40, -inf  ;;  %v1025_v42 = vsel %vm320_vm9, %v1733_v61, 0.0 }
 0xb73   :  { %1184 = vmax.xlane.f32.xlu2 %v1183_v41  ;;  %1026 = vadd.xlane.f32.xlu0 %v1025_v42 }
 0xb78   :  { %v1098_v43 = vpop.f32.mrf.mxu0 }
 0xb79   :  { %v1101_v44 = vmul.f32 0.25, %v1098_v43 }
 0xb7b   :  { %v1102_v45 = vadd.f32 %v1101_v44, %v2201_v35 }
 0xb7d   :  { %v1103_v46 = vsel %vm320_vm9, %v1102_v45, -inf }
 0xb7e   :  { %1104 = vmax.xlane.f32.xlu0 %v1103_v46 }
 0xb8b   :  { %1043 = vrot.lane.b32.xlu2 %v2339_v39, %s2003_s29 }
 0xb92   :  { %1207 = vrot.lane.b32.xlu0 %v2365_v12, %s2003_s29 }
 0xbe6   :  { %v1185_v50 = vpop.xlane.xlu2 %1184  ;;  %v1027_v48 = vpop.xlane.xlu0 %1026 }
 0xbe7   :  { %v1186_v47 = vsub.f32 %v1182_v40, %v1185_v50  ;;  %1734 = vrcp.f32 %v1027_v48  ;;  %v1039_v57 = vand.u32 2147483648, %v1027_v48  ;;  %v1037_v60 = vand.u32 2147483647, %v1027_v48  ;;  %v1685_v50 = vld [vmem:[%s2513_s7 + $0x1] ss:$0 sm:$0xff] }
 0xbe8   :  { %vm1033_vm4 = vweird.f32 %v1027_v48 }
 0xbe9   :  { %v1187_v49 = vmul.f32 1.442695, %v1186_v47  ;;  %v1040_v0 = vor.u32 1.1754944e-38, %v1039_v57  ;;  %vm1038_vm6 = vcmp.eq.f32.partialorder %v1037_v60, 8.507059e+37 }
 0xbeb   :  { %1736 = vpow2.f32 %v1187_v49 }
 0xbed   :  { %v1735_v51 = vpop.eup %1734 }
 0xbee   :  { %v1044_v53 = vpop.permute.xlu2 %1043  ;;  %v1029_v54 = vmul.f32 %v1735_v51, %v1027_v48  ;;  %vm1034_vm3 = vweird.f32 %v1735_v51 }
 0xbef   :  { %1064 = vmatpush.msra.mxu3 %v1044_v53  ;;  %vm1035_vm5 = vmor %vm1033_vm4, %vm1034_vm3 }
 0xbf0   :  { %v1030_v55 = vsub.f32 1.0, %v1029_v54 }
 0xbf1   :  { %v1737_v35 = vpop.eup %1736  ;;  %v1105_v56 = vpop.xlane.xlu0 %1104 }
 0xbf2   :  { %v1106_v58 = vsub.f32 %v1102_v45, %v1105_v56  ;;  %v1189_v39 = vsel %vm320_vm9, %v1737_v35, 0.0  ;;  %v1031_v59 = vmul.f32 %v1735_v51, %v1030_v55 }
 0xbf3   :  { %1190 = vadd.xlane.f32.xlu1 %v1189_v39 }
 0xbf4   :  { %v1107_v62 = vmul.f32 1.442695, %v1106_v58  ;;  %v1032_v63 = vadd.f32 %v1735_v51, %v1031_v59 }
 0xbf6   :  { %1738 = vpow2.f32 %v1107_v62  ;;  %v1036_v1 = vsel %vm1035_vm5, %v1735_v51, %v1032_v63 }
 0xbf7   :  { %v1041_v3 = vsel %vm1038_vm6, %v1040_v0, %v1036_v1  ;;  %v1636_v0 = vld [vmem:[%s2516_s10 + $0x30] sm:$0xff]  ;;  %v1635_v1 = vld [vmem:[%s2516_s10 + $0x28] sm:$0xff] }
 0xbf8   :  { %v1042_v5 = vmul.f32 %v1733_v61, %v1041_v3  ;;  %v1626_v61 = vld [vmem:[%s2512_s6 + $0x20] sm:$0xff] }
 0xbf9   :  { %1269 = vmatpush.msrb.mxu0 %v1626_v61  ;;  %v1634_v3 = vld [vmem:[%s2516_s10 + $0x20] sm:$0xff]  ;;  %v1643_v61 = vld [vmem:[%s2518_s12 + $0x50] sm:$0xff] }
 0xbfa   :  { %1619 = vmatmul.msk.f32.vlgmr.msra.gmra.mxu3 %vm320_vm9, %v1042_v5 }
 0xbfc   :  { %v1739_v4 = vpop.eup %1738 }
 0xbfd   :  { %v1109_v6 = vsel %vm320_vm9, %v1739_v4, 0.0 }
 0xbfe   :  { %1110 = vadd.xlane.f32.xlu1 %v1109_v6 }
 0xc04   :  { %v1208_v7 = vpop.permute.xlu0 %1207 }
 0xc05   :  { %1228 = vmatpush.msrb.mxu3 %v1208_v7 }
 0xc17   :  { %1127 = vrot.lane.b32.xlu1 %v2365_v12, %s2002_s4 }
 0xc66   :  { %v1191_v8 = vpop.xlane.xlu1 %1190 }
 0xc67   :  { %1740 = vrcp.f32 %v1191_v8  ;;  %v1203_v12 = vand.u32 2147483648, %v1191_v8  ;;  %v1201_v19 = vand.u32 2147483647, %v1191_v8  ;;  %vm1197_vm10 = vweird.f32 %v1191_v8 }
 0xc69   :  { %v1204_v21 = vor.u32 1.1754944e-38, %v1203_v12  ;;  %vm1202_vm12 = vcmp.eq.f32.partialorder %v1201_v19, 8.507059e+37 }
 0xc6d   :  { %v1741_v13 = vpop.eup %1740 }
 0xc6e   :  { %v1193_v15 = vmul.f32 %v1741_v13, %v1191_v8  ;;  %vm1198_vm7 = vweird.f32 %v1741_v13 }
 0xc6f   :  { %vm1199_vm11 = vmor %vm1197_vm10, %vm1198_vm7 }
 0xc70   :  { %v1194_v16 = vsub.f32 1.0, %v1193_v15  ;;  %v1686_v15 = vld [vmem:[#allocation10 + $0x1] ss:$0 sm:$0xff] }
 0xc71   :  { %v1111_v17 = vpop.xlane.xlu1 %1110 }
 0xc72   :  { %v1195_v18 = vmul.f32 %v1741_v13, %v1194_v16  ;;  %1742 = vrcp.f32 %v1111_v17  ;;  %v1123_v32 = vand.u32 2147483648, %v1111_v17  ;;  %vm1117_vm14 = vweird.f32 %v1111_v17 }
 0xc73   :  { %v1121_v33 = vand.u32 2147483647, %v1111_v17 }
 0xc74   :  { %v1196_v20 = vadd.f32 %v1741_v13, %v1195_v18  ;;  %v1124_v29 = vor.u32 1.1754944e-38, %v1123_v32 }
 0xc75   :  { %vm1122_vm2 = vcmp.eq.f32.partialorder %v1121_v33, 8.507059e+37 }
 0xc76   :  { %v1200_v22 = vsel %vm1199_vm11, %v1741_v13, %v1196_v20 }
 0xc77   :  { %v1205_v24 = vsel %vm1202_vm12, %v1204_v21, %v1200_v22 }
 0xc78   :  { %v1743_v23 = vpop.eup %1742  ;;  %v1206_v25 = vmul.f32 %v1737_v35, %v1205_v24 }
 0xc79   :  { %v1113_v26 = vmul.f32 %v1743_v23, %v1111_v17  ;;  %vm1118_vm13 = vweird.f32 %v1743_v23  ;;  %v1687_v17 = vld [vmem:[%s2515_s9 + $0x1] ss:$0 sm:$0xff] }
 0xc7a   :  { %1625 = vmatmul.msk.f32.vlgmr.msrb.gmra.mxu3 %vm320_vm9, %v1206_v25  ;;  %vm1119_vm15 = vmor %vm1117_vm14, %vm1118_vm13  ;;  %vm1500_vm14 = vcmask 1040384  }
 0xc7b   :  { %v1114_v27 = vsub.f32 1.0, %v1113_v26 }
 0xc7d   :  { %v1115_v28 = vmul.f32 %v1743_v23, %v1114_v27  ;;  %v1066_v30 = vpop.f32.mrf.mxu3 }
 0xc7e   :  { %1070 = vrot.lane.b32.xlu0 %v1066_v30, %s2541_s25 }
 0xc7f   :  { %v1116_v31 = vadd.f32 %v1743_v23, %v1115_v28 }
 0xc81   :  { %v1120_v36 = vsel %vm1119_vm15, %v1743_v23, %v1116_v31 }
 0xc82   :  { %v1125_v37 = vsel %vm1122_vm2, %v1124_v29, %v1120_v36  ;;  %v1648_v36 = vld [vmem:[%s2518_s12 + $0x78] sm:$0xff]  ;;  %v1647_v29 = vld [vmem:[%s2518_s12 + $0x70] sm:$0xff] }
 0xc83   :  { %v1126_v40 = vmul.f32 %v1739_v4, %v1125_v37  ;;  %1422 = vmatpush.msrb.mxu1 %v1648_v36  ;;  %v1646_v37 = vld [vmem:[%s2518_s12 + $0x68] sm:$0xff] }
 0xc85   :  { %1423 = vmatpush.msrb.mxu1 %v1647_v29 }
 0xc87   :  { %1424 = vmatpush.msrb.mxu1 %v1646_v37 }
 0xc89   :  { %v1128_v38 = vpop.permute.xlu1 %1127 }
 0xc8a   :  { %1148 = vmatpush.msra.mxu2 %v1128_v38  ;;  %v1645_v38 = vld [vmem:[%s2518_s12 + $0x60] sm:$0xff] }
 0xc8b   :  { %1622 = vmatmul.msk.f32.vlgmr.msra.gmra.mxu2 %vm320_vm9, %v1126_v40  ;;  %1425 = vmatpush.msrb.mxu1 %v1645_v38  ;;  %v1644_v40 = vld [vmem:[%s2518_s12 + $0x58] sm:$0xff] }
 0xc8d   :  { %1426 = vmatpush.msrb.mxu1 %v1644_v40 }
 0xc8f   :  { %1427 = vmatpush.msrb.mxu1 %v1643_v61 }
 0xcf0   :  { %v1071_v41 = vpop.permute.xlu0 %1070 }
 0xcf1   :  { %v1073_v42 = vsel %vm292_vm8, %v2381_v52, %v1071_v41  ;;  %v1642_v41 = vld [vmem:[%s2518_s12 + $0x48] sm:$0xff] }
 0xcf2   :  { %1631 = vmatmul.msk.f32.vlgmr.msrb.gmra.mxu0 %vm189_vm0, %v1073_v42  ;;  %1428 = vmatpush.msrb.mxu1 %v1642_v41  ;;  %v1641_v42 = vld [vmem:[%s2518_s12 + $0x40] sm:$0xff] }
 0xcf4   :  { %1429 = vmatpush.msrb.mxu1 %v1641_v42 }
 0xcfd   :  { %v1230_v43 = vpop.f32.mrf.mxu3 }
 0xcfe   :  { %1234 = vrot.lane.b32.xlu2 %v1230_v43, %s2541_s25  ;;  %v1688_v43 = vld [vmem:[%s2517_s11 + $0x1] ss:$0 sm:$0xff] }
 0xd0e   :  { %v1150_v44 = vpop.f32.mrf.mxu2 }
 0xd58   :  { %v1235_v45 = vpop.permute.xlu2 %1234 }
 0xd59   :  { %v1237_v46 = vsel %vm292_vm8, %v1150_v44, %v1235_v45 }
 0xd5a   :  { %1632 = vmatmul.msk.f32.gmra.mxu0 %vm189_vm0, %v1237_v46 }
 0xd6f   :  { %v1271_v47 = vpop.f32.mrf.mxu0 }
 0xd70   :  { %v1272_v48 = vadd.f32 %v1685_v50, %v1271_v47 }
 0xd72   :  { %v1277_v49 = vadd.f32 %v1272_v48, %v2331_v34 }
 0xd74   :  { %v1283_v52 = vsel %vm189_vm0, %v1277_v49, 0.0 }
 0xd75   :  { %1284 = vadd.xlane.f32.xlu0 %v1283_v52 }
 0xdd7   :  { %v1274_v51 = vpop.f32.mrf.mxu0 }
 0xdd8   :  { %v1275_v53 = vadd.f32 %v1685_v50, %v1274_v51 }
 0xdda   :  { %v1278_v54 = vadd.f32 %v1275_v53, %v2359_v2  ;;  %v1637_v2 = vld [vmem:[%s2516_s10 + $0x38] sm:$0xff]  ;;  %s1571_s10 = sshll.u32 %s2004_s30, 4  ;;  %s1572_s10 = int_to_ptr.vmem [resolvable:$true] %s1571_s10 }
 0xddb   :  { %1365 = vmatpush.msrb.mxu2 %v1637_v2  ;;  %v1689_v2 = vld [vmem:[%s2519_s13 + $0x1] ss:$0 sm:$0xff] }
 0xddc   :  { %v1286_v35 = vsel %vm189_vm0, %v1278_v54, 0.0 }
 0xddd   :  { %1287 = vadd.xlane.f32.xlu2 %v1286_v35  ;;  %1366 = vmatpush.msrb.mxu2 %v1636_v0 }
 0xddf   :  { %1367 = vmatpush.msrb.mxu2 %v1635_v1 }
 0xde1   :  { %1368 = vmatpush.msrb.mxu2 %v1634_v3 }
 0xde8   :  { %v1285_v55 = vpop.xlane.xlu0 %1284 }
 0xde9   :  { %v1289_v56 = vmul.f32 %v1285_v55, %v2140_v10 }
 0xdeb   :  { %v1291_v57 = vsub.f32 %v1277_v49, %v1289_v56 }
 0xded   :  { %v1293_v58 = vmul.f32 %v1291_v57, %v1291_v57 }
 0xdef   :  { %v1295_v39 = vsel %vm189_vm0, %v1293_v58, 0.0 }
 0xdf0   :  { %1296 = vadd.xlane.f32.xlu1 %v1295_v39 }
 0xe50   :  { %v1288_v59 = vpop.xlane.xlu2 %1287 }
 0xe51   :  { %v1290_v34 = vmul.f32 %v1288_v59, %v2140_v10 }
 0xe53   :  { %v1292_v60 = vsub.f32 %v1278_v54, %v1290_v34 }
 0xe55   :  { %v1294_v62 = vmul.f32 %v1292_v60, %v1292_v60 }
 0xe57   :  { %v1298_v63 = vsel %vm189_vm0, %v1294_v62, 0.0 }
 0xe58   :  { %1299 = vadd.xlane.f32.xlu2 %v1298_v63 }
 0xe63   :  { %v1297_v5 = vpop.xlane.xlu1 %1296 }
 0xe64   :  { %v1301_v4 = vmul.f32 %v1297_v5, %v2140_v10 }
 0xe66   :  { %v1303_v6 = vadd.f32 1e-12, %v1301_v4 }
 0xe68   :  { %1744 = vrsqrt.f32 %v1303_v6  ;;  %vm1311_vm9 = vweird.f32 %v1303_v6 }
 0xe6e   :  { %v1745_v7 = vpop.eup %1744 }
 0xe6f   :  { %v1306_v8 = vmul.f32 %v1745_v7, %v1303_v6  ;;  %vm1312_vm8 = vweird.f32 %v1745_v7 }
 0xe70   :  { %vm1313_vm3 = vmor %vm1311_vm9, %vm1312_vm8 }
 0xe71   :  { %v1307_v9 = vmul.f32 %v1745_v7, %v1306_v8 }
 0xe73   :  { %v1308_v11 = vmul.f32 0.5, %v1307_v9 }
 0xe75   :  { %v1309_v13 = vsub.f32 1.5, %v1308_v11 }
 0xe77   :  { %v1310_v14 = vmul.f32 %v1745_v7, %v1309_v13 }
 0xe79   :  { %v1314_v16 = vsel %vm1313_vm3, %v1745_v7, %v1310_v14 }
 0xe7a   :  { %v1325_v12 = vmul.f32 %v1314_v16, %v1291_v57 }
 0xe7c   :  { %v1330_v18 = vmul.f32 %v1686_v15, %v1325_v12 }
 0xe7e   :  { %v2445_v19 = vadd.f32 %v1687_v17, %v1330_v18 }
 0xe80   :  { %1639 = vmatmul.msk.f32.vlgmr.msrb.gmra.mxu2 %vm189_vm0, %v2445_v19 }
 0xecb   :  { %v1300_v20 = vpop.xlane.xlu2 %1299 }
 0xecc   :  { %v1302_v21 = vmul.f32 %v1300_v20, %v2140_v10 }
 0xece   :  { %v1304_v22 = vadd.f32 1e-12, %v1302_v21 }
 0xed0   :  { %1746 = vrsqrt.f32 %v1304_v22  ;;  %vm1321_vm5 = vweird.f32 %v1304_v22 }
 0xed6   :  { %v1747_v24 = vpop.eup %1746 }
 0xed7   :  { %v1316_v23 = vmul.f32 %v1747_v24, %v1304_v22  ;;  %vm1322_vm4 = vweird.f32 %v1747_v24 }
 0xed8   :  { %vm1323_vm6 = vmor %vm1321_vm5, %vm1322_vm4 }
 0xed9   :  { %v1317_v25 = vmul.f32 %v1747_v24, %v1316_v23  ;;  %v1504_v23 = vld [vmem:[#allocation13 + $0x10] sm:$0xff] }
 0xedb   :  { %v1318_v26 = vmul.f32 0.5, %v1317_v25 }
 0xedd   :  { %v1319_v27 = vsub.f32 1.5, %v1318_v26  ;;  %v1503_v26 = vld [vmem:[#allocation13 + $0x8] sm:$0xff] }
 0xedf   :  { %v1320_v28 = vmul.f32 %v1747_v24, %v1319_v27  ;;  %v1502_v27 = vld [vmem:[#allocation13] sm:$0xff] }
 0xee1   :  { %v1324_v30 = vsel %vm1323_vm6, %v1747_v24, %v1320_v28  ;;  %v1505_v24 = vld [vmem:[#allocation13 + $0x18] sm:$0xff] }
 0xee2   :  { %v1326_v31 = vmul.f32 %v1324_v30, %v1292_v60  ;;  %1525 = vmatpush.msra.mxu3 %v1505_v24 }
 0xee4   :  { %v1331_v32 = vmul.f32 %v1686_v15, %v1326_v31  ;;  %1526 = vmatpush.msra.mxu3 %v1504_v23 }
 0xee6   :  { %v1336_v33 = vadd.f32 %v1687_v17, %v1331_v32  ;;  %1527 = vmatpush.msra.mxu3 %v1503_v26 }
 0xee8   :  { %1640 = vmatmul.msk.f32.gmra.mxu2 %vm189_vm0, %v1336_v33  ;;  %1528 = vmatpush.msra.mxu3 %v1502_v27 }
 0xf03   :  { %v1370_v44 = vpop.f32.mrf.mxu2 }
 0xf04   :  { %v1371_v45 = vadd.f32 %v1688_v43, %v1370_v44 }
 0xf06   :  { %v1376_v46 = vmul.f32 %v1371_v45, %v1371_v45 }
 0xf08   :  { %v1378_v50 = vmul.f32 %v1376_v46, %v1371_v45 }
 0xf0a   :  { %v1380_v47 = vmul.f32 0.044715, %v1378_v50 }
 0xf0c   :  { %v1382_v48 = vadd.f32 %v1380_v47, %v1371_v45 }
 0xf0e   :  { %v1384_v49 = vmul.f32 0.7978846, %v1382_v48 }
 0xf10   :  { %1748 = vtanh.f32 %v1384_v49  ;;  %v1691_v49 = vld [vmem:[%s2521_s15 + $0x1] ss:$0 sm:$0xff] }
 0xf16   :  { %v1749_v52 = vpop.eup %1748 }
 0xf17   :  { %v1388_v51 = vadd.f32 1.0, %v1749_v52 }
 0xf19   :  { %v1390_v53 = vmul.f32 0.5, %v1388_v51 }
 0xf1b   :  { %v1392_v54 = vmul.f32 %v1390_v53, %v1371_v45  ;;  %v1690_v45 = vld [vmem:[#allocation11 + $0x1] ss:$0 sm:$0xff] }
 0xf1d   :  { %1650 = vmatmul.msk.f32.vlgmr.msrb.gmra.mxu1 %vm783_vm1, %v1392_v54 }
 0xf6b   :  { %v1373_v35 = vpop.f32.mrf.mxu2 }
 0xf6c   :  { %v1374_v55 = vadd.f32 %v1688_v43, %v1373_v35  ;;  %v1537_v35 = vld [vmem:[#allocation14 + $0x18] sm:$0xff] }
 0xf6d   :  { %1557 = vmatpush.msrb.mxu3 %v1537_v35 }
 0xf6e   :  { %v1377_v56 = vmul.f32 %v1374_v55, %v1374_v55 }
 0xf70   :  { %v1379_v57 = vmul.f32 %v1377_v56, %v1374_v55  ;;  %v1535_v56 = vld [vmem:[#allocation14 + $0x8] sm:$0xff] }
 0xf72   :  { %v1381_v58 = vmul.f32 0.044715, %v1379_v57  ;;  %v1534_v57 = vld [vmem:[#allocation14] sm:$0xff] }
 0xf74   :  { %v1383_v39 = vadd.f32 %v1381_v58, %v1374_v55  ;;  %v1692_v58 = vld [vmem:[%s2523_s17] ss:$0 sm:$0xff] }
 0xf76   :  { %v1385_v59 = vmul.f32 0.7978846, %v1383_v39 }
 0xf78   :  { %1750 = vtanh.f32 %v1385_v59 }
 0xf7e   :  { %v1751_v34 = vpop.eup %1750 }
 0xf7f   :  { %v1389_v60 = vadd.f32 1.0, %v1751_v34 }
 0xf81   :  { %v1391_v62 = vmul.f32 0.5, %v1389_v60  ;;  %v1693_v60 = vld [vmem:[%s2543_s8] ss:$0 sm:$0xff] }
 0xf83   :  { %v1393_v63 = vmul.f32 %v1391_v62, %v1374_v55  ;;  %v1536_v55 = vld [vmem:[#allocation14 + $0x10] sm:$0xff] }
 0xf84   :  { %1558 = vmatpush.msrb.mxu3 %v1536_v55 }
 0xf85   :  { %1651 = vmatmul.msk.f32.gmra.mxu1 %vm783_vm1, %v1393_v63 }
 0xf86   :  { %1559 = vmatpush.msrb.mxu3 %v1535_v56 }
 0xf88   :  { %1560 = vmatpush.msrb.mxu3 %v1534_v57 }
 0xf9a   :  { %v1431_v0 = vpop.f32.mrf.mxu1 }
 0xf9b   :  { %v1432_v1 = vadd.f32 %v1689_v2, %v1431_v0 }
 0xf9d   :  { %v1437_v3 = vadd.f32 %v1432_v1, %v2445_v19 }
 0xf9f   :  { %v1443_v5 = vsel %vm189_vm0, %v1437_v3, 0.0 }
 0xfa0   :  { %1444 = vadd.xlane.f32.xlu1 %v1443_v5 }
0x1002   :  { %v1434_v4 = vpop.f32.mrf.mxu1 }
0x1003   :  { %v1435_v6 = vadd.f32 %v1689_v2, %v1434_v4 }
0x1005   :  { %v1438_v7 = vadd.f32 %v1435_v6, %v1336_v33 }
0x1007   :  { %v1446_v8 = vsel %vm189_vm0, %v1438_v7, 0.0 }
0x1008   :  { %1447 = vadd.xlane.f32.xlu0 %v1446_v8 }
0x1013   :  { %v1445_v9 = vpop.xlane.xlu1 %1444 }
0x1014   :  { %v1449_v11 = vmul.f32 %v1445_v9, %v2140_v10 }
0x1016   :  { %v1451_v13 = vsub.f32 %v1437_v3, %v1449_v11 }
0x1018   :  { %v1453_v14 = vmul.f32 %v1451_v13, %v1451_v13 }
0x101a   :  { %v1455_v15 = vsel %vm189_vm0, %v1453_v14, 0.0 }
0x101b   :  { %1456 = vadd.xlane.f32.xlu0 %v1455_v15 }
0x107b   :  { %v1448_v16 = vpop.xlane.xlu0 %1447 }
0x107c   :  { %v1450_v12 = vmul.f32 %v1448_v16, %v2140_v10 }
0x107e   :  { %v1452_v17 = vsub.f32 %v1438_v7, %v1450_v12 }
0x1080   :  { %v1454_v18 = vmul.f32 %v1452_v17, %v1452_v17 }
0x1082   :  { %v1458_v19 = vsel %vm189_vm0, %v1454_v18, 0.0 }
0x1083   :  { %1459 = vadd.xlane.f32.xlu2 %v1458_v19 }
0x108e   :  { %v1457_v20 = vpop.xlane.xlu0 %1456 }
0x108f   :  { %v1461_v21 = vmul.f32 %v1457_v20, %v2140_v10 }
0x1091   :  { %v1463_v22 = vadd.f32 1e-12, %v1461_v21 }
0x1093   :  { %1752 = vrsqrt.f32 %v1463_v22  ;;  %vm1471_vm7 = vweird.f32 %v1463_v22 }
0x1099   :  { %v1753_v25 = vpop.eup %1752 }
0x109a   :  { %v1466_v28 = vmul.f32 %v1753_v25, %v1463_v22  ;;  %vm1472_vm1 = vweird.f32 %v1753_v25 }
0x109b   :  { %vm1473_vm10 = vmor %vm1471_vm7, %vm1472_vm1 }
0x109c   :  { %v1467_v32 = vmul.f32 %v1753_v25, %v1466_v28 }
0x109e   :  { %v1468_v36 = vmul.f32 0.5, %v1467_v32 }
0x10a0   :  { %v1469_v29 = vsub.f32 1.5, %v1468_v36 }
0x10a2   :  { %v1470_v40 = vmul.f32 %v1753_v25, %v1469_v29 }
0x10a4   :  { %v1474_v42 = vsel %vm1473_vm10, %v1753_v25, %v1470_v40 }
0x10f6   :  { %v1460_v30 = vpop.xlane.xlu2 %1459 }
0x10f7   :  { %v1462_v31 = vmul.f32 %v1460_v30, %v2140_v10  ;;  %v1485_v10 = vmul.f32 %v1474_v42, %v1451_v13 }
0x10f9   :  { %v1464_v33 = vadd.f32 1e-12, %v1462_v31  ;;  %v1490_v47 = vmul.f32 %v1690_v45, %v1485_v10 }
0x10fb   :  { %1754 = vrsqrt.f32 %v1464_v33  ;;  %vm1481_vm12 = vweird.f32 %v1464_v33  ;;  %v1495_v51 = vadd.f32 %v1691_v49, %v1490_v47 }
0x1101   :  { %v1755_v37 = vpop.eup %1754 }
0x1102   :  { %v1476_v38 = vmul.f32 %v1755_v37, %v1464_v33  ;;  %vm1482_vm11 = vweird.f32 %v1755_v37 }
0x1103   :  { %vm1483_vm13 = vmor %vm1481_vm12, %vm1482_vm11 }
0x1104   :  { %v1477_v61 = vmul.f32 %v1755_v37, %v1476_v38 }
0x1106   :  { %v1478_v41 = vmul.f32 0.5, %v1477_v61 }
0x1108   :  { %v1479_v43 = vsub.f32 1.5, %v1478_v41 }
0x110a   :  { %v1480_v44 = vmul.f32 %v1755_v37, %v1479_v43 }
0x110c   :  { %v1484_v46 = vsel %vm1483_vm13, %v1755_v37, %v1480_v44 }
0x110d   :  { %v1486_v50 = vmul.f32 %v1484_v46, %v1452_v17 }
0x110f   :  { %v1491_v48 = vmul.f32 %v1690_v45, %v1486_v50 }
0x1111   :  { %v1496_v52 = vadd.f32 %v1691_v49, %v1491_v48 }
0x1113   :  { %v1498_v53 = vrot.slane %v1496_v52, 7 }
0x1115   :  { %v1501_v54 = vsel %vm1500_vm14, %v1495_v51, %v1498_v53 }
0x1116   :  { %1653 = vmatmul.msk.f32.vlgmr.msra.gmra.mxu3 %vm189_vm0, %v1501_v54 }
0x1199   :  { %v1530_v39 = vpop.f32.mrf.mxu3 }
0x119a   :  { %v1531_v59 = vadd.f32 %v1692_v58, %v1530_v39 }
0x119c   :  { %1756 = vtanh.f32 %v1531_v59 }
0x11a2   :  { %v1757_v34 = vpop.eup %1756 }
0x11a3   :  { %1654 = vmatmul.msk.f32.vlgmr.msrb.gmra.mxu3 %vm189_vm0, %v1757_v34 }
0x1226   :  { %v1562_v62 = vpop.f32.mrf.mxu3 }
0x1227   :  { %v1563_v63 = vadd.f32 %v1693_v60, %v1562_v62 }
0x1229   :  { %1565 = vst [vmem:[#allocation16] sm:$0x3] %v1563_v63 }
0x122a   :  { %1576 = dma.vmem_to_hbm [thread:$0]  %s1572_s10, 32, %s1574_s3, [#allocation4]  }
0x122b   :  { %1984 = dma.done.wait [#allocation4], 32  }
0x122c   :  { %1985 = vsyncadd [#allocation4], 4294967264 }
0x122d   :  { %1581 = vsyncpa [#allocation3], 1 }
0x122e   :  { %1582 = vsyncpa [#allocation6], 1 }
0x122f   :  { %1583 = vsyncpa [#allocation9], 1 }
0x1230   :  { %1584 = vsyncpa [#allocation12], 1 }
0x1231   :  { %1585 = vsyncpa [#allocation15], 1 }
0x1232   :  { %1586 = vsyncpa [#allocation4], 1 }

</bundles_post_ra>
